<compile_context>
chip_gen: v7x
topology: tpu7x:2x2x1
jax: 0.10.0
libtpu: 0.0.40
codegen_flags: <defaults>
</compile_context>

<pallas_src>
import functools
import math

import jax
import jax.numpy as jnp
from jax.experimental import pallas as pl
from jax.experimental.pallas import tpu as pltpu


# ----------------------------------------------------------------------------
# In-kernel helpers (traced inside the single fused kernel)
# ----------------------------------------------------------------------------
def _lane_coords(hw, img_w):
    """Per-lane (y, x) image coordinates, computed in-kernel (no DMA'd tables)."""
    p = jax.lax.broadcasted_iota(jnp.int32, (1, hw), 1)
    if img_w & (img_w - 1) == 0:                      # power-of-two width
        shift = img_w.bit_length() - 1
        y = p >> shift
        x = p & (img_w - 1)
    else:
        # floor(p / W) via f32 multiply + exact +-1 fixup (valid for p < 2**24)
        y = jnp.floor(p.astype(jnp.float32) * (1.0 / img_w)).astype(jnp.int32)
        y = jnp.where(y * img_w > p, y - 1, y)
        y = jnp.where(p - y * img_w >= img_w, y + 1, y)
        x = p - y * img_w
    return y, x


def _edge_masks(y, x, img_h, img_w, stride):
    """9 per-tap 0/1 masks (1, HW) f32; None for the centre tap (always valid)."""
    masks = []
    for t in range(9):
        dy, dx = t // 3 - 1, t % 3 - 1
        if dy == 0 and dx == 0:
            masks.append(None)
            continue
        yy = y + stride * dy
        xx = x + stride * dx
        ok = (yy >= 0) & (yy < img_h) & (xx >= 0) & (xx < img_w)
        masks.append(ok.astype(jnp.float32))
    return masks


def _stack_taps(acts, hw, img_w, stride, masks):
    """Stack the 9 shifted+masked taps of one or more inputs into (9*Cin, HW) bf16.

    K order is tap-major, then input order, then channel -- must match the
    host-side weight reshape in _wmat (and the [up, skip] order for the
    decoder conv).  The +-stride*W row rolls are shared across the 3 taps of
    each dy; dx taps are +-stride lane rolls of those bases.
    """
    bases = []
    for act in acts:
        b = {0: act}
        for dy in (-1, 1):
            b[dy] = pltpu.roll(act, (-dy * stride * img_w) % hw, 1)
        bases.append(b)
    pieces = []
    for t in range(9):
        dy, dx = t // 3 - 1, t % 3 - 1
        m = masks[t]
        for b in bases:
            sh = b[dy]
            if dx != 0:
                sh = pltpu.roll(sh, (-dx * stride) % hw, 1)
            if m is not None:
                sh = sh * m                      # zero out-of-bounds taps (f32)
            pieces.append(sh)
    return jnp.concatenate(pieces, axis=0).astype(jnp.bfloat16)


def _conv3x3(acts, w_ref, b_ref, masks, hw, img_w, stride, relu=True):
    """3x3 conv (pad 1, tap offsets scaled by `stride`) in the (C, HW) layout.

    acts : list of (Cin_i, HW) f32 values (skip-concat folded via the list).
    w_ref: (Cout, 9*sum(Cin_i)) bf16 ref.   b_ref: (Cout, 1) f32 ref.
    One MXU matmul per conv with f32 accumulation.
    """
    stacked = _stack_taps(acts, hw, img_w, stride, masks)
    acc = jnp.dot(w_ref[...], stacked, preferred_element_type=jnp.float32)
    acc = acc + b_ref[...]
    if relu:
        acc = jnp.maximum(acc, 0.0)
    return acc


def _maxpool2x2_replicated(a, x_even, y_even, hw, img_w):
    """2x2 maxpool whose result is replicated over each 2x2 block (still (C, HW)).

    Each lane maxes with its in-block horizontal partner (x+1 if x even else
    x-1), then with its in-block vertical partner.  Nearest 2x upsample of the
    pooled map is the identity in this representation, and stride-2 tap
    offsets give the exact half-resolution convs -- no compaction matrices.
    """
    right = pltpu.roll(a, hw - 1, 1)          # right[p] = a[p + 1]
    left = pltpu.roll(a, 1, 1)                # left[p]  = a[p - 1]
    hx = jnp.maximum(a, jnp.where(x_even, right, left))
    down = pltpu.roll(hx, hw - img_w, 1)      # down[p] = hx[p + W]
    up = pltpu.roll(hx, img_w, 1)             # up[p]   = hx[p - W]
    return jnp.maximum(hx, jnp.where(y_even, down, up))


# ----------------------------------------------------------------------------
# The fused kernel
# ----------------------------------------------------------------------------
def cons_unet_kernel(
    x_ref,                                   # (1, 4, HW) f32 input (depth ++ nmap)
    w_e1a, b_e1a, w_e1b, b_e1b,              # encoder
    w_b1a, b_b1a, w_b1b, b_b1b,              # bottleneck
    w_d1, b_d1a, w_d1b, b_d1b,               # decoder (w_d1 folds the skip concat)
    w_out, b_out,                            # 1x1 projection
    o_ref,                                   # (1, 4, HW) f32 output
    *, img_h, img_w,
):
    x = x_ref[0]                                             # (4, HW) f32
    hw = x.shape[-1]

    # per-lane coordinates, edge masks, 2x2 parities (VPU-only, no DMA)
    yc, xc = _lane_coords(hw, img_w)
    m1 = _edge_masks(yc, xc, img_h, img_w, 1)                # full-res taps
    m2 = _edge_masks(yc, xc, img_h, img_w, 2)                # stride-2 taps
    x_even = (xc & 1) == 0
    y_even = (yc & 1) == 0

    # ---- encoder (full resolution) ----
    e1 = _conv3x3([x], w_e1a, b_e1a, m1, hw, img_w, 1)
    e1 = _conv3x3([e1], w_e1b, b_e1b, m1, hw, img_w, 1)

    # ---- 2x2 maxpool (block-replicated half-resolution representation) ----
    p1 = _maxpool2x2_replicated(e1, x_even, y_even, hw, img_w)

    # ---- bottleneck (half resolution via stride-2 tap offsets) ----
    b1 = _conv3x3([p1], w_b1a, b_b1a, m2, hw, img_w, 2)
    b1 = _conv3x3([b1], w_b1b, b_b1b, m2, hw, img_w, 2)
    u1 = b1            # nearest 2x upsample == identity for block-replicated maps

    # ---- decoder: skip concat [up(16), enc(8)] folded into one stacked matmul ----
    d1 = _conv3x3([u1, e1], w_d1, b_d1a, m1, hw, img_w, 1)
    d1 = _conv3x3([d1], w_d1b, b_d1b, m1, hw, img_w, 1)

    # ---- 1x1 projection + residual + channel L2-normalize (F.normalize) ----
    y = jnp.dot(w_out[...], d1.astype(jnp.bfloat16),
                preferred_element_type=jnp.float32) + b_out[...]
    out = y + x                                              # (4, HW) f32
    n1 = out[1:2, :]
    n2 = out[2:3, :]
    n3 = out[3:4, :]
    ss = n1 * n1 + n2 * n2 + n3 * n3                         # (1, HW)
    # 1 / max(||n||, 1e-12) == rsqrt(max(||n||^2, 1e-24))  (EUP)
    inv = jax.lax.rsqrt(jnp.maximum(ss, 1e-24))
    o_ref[0, 0:1, :] = out[0:1, :]                           # depth passthrough
    o_ref[0, 1:4, :] = out[1:4, :] * inv                     # normalized normals


# ----------------------------------------------------------------------------
# Fused pallas_call wrapper
# ----------------------------------------------------------------------------
def _wmat(w):
    """(3,3,Cin,Cout) -> (Cout, 9*Cin) bf16, tap-major / channel-minor K order."""
    kh, kw, cin, cout = w.shape
    return jnp.transpose(w, (3, 0, 1, 2)).reshape(cout, kh * kw * cin).astype(jnp.bfloat16)


def _bcol(b):
    return b.reshape(-1, 1).astype(jnp.float32)


def _unet_fused(x_flat, params, H, W):
    """x_flat: (B, 4, H*W) -> (B, 4, H*W)."""
    assert H % 2 == 0 and W % 2 == 0, "UNet(depth 2) needs even H and W"
    B, C, HW = x_flat.shape

    ins = [
        x_flat.astype(jnp.float32),
        _wmat(params["enc1_w1"]), _bcol(params["enc1_b1"]),
        _wmat(params["enc1_w2"]), _bcol(params["enc1_b2"]),
        _wmat(params["bott_w1"]), _bcol(params["bott_b1"]),
        _wmat(params["bott_w2"]), _bcol(params["bott_b2"]),
        # decoder conv1: Cin axis is ordered [upsampled(16), encoder skip(8)],
        # matching the in-kernel stack order _conv3x3([u1, e1], ...).
        _wmat(params["dec1_w1"]), _bcol(params["dec1_b1"]),
        _wmat(params["dec1_w2"]), _bcol(params["dec1_b2"]),
        params["out_w"].T.astype(jnp.bfloat16),              # (4, 8)
        _bcol(params["out_b"]),
    ]

    in_specs = [pl.BlockSpec((1, C, HW), lambda b: (b, 0, 0))]
    in_specs += [pl.BlockSpec(a.shape, lambda b: (0, 0)) for a in ins[1:]]

    kernel = functools.partial(cons_unet_kernel, img_h=H, img_w=W)

    # Advisory cost estimate (conv MACs; bottleneck runs block-replicated at HW)
    macs_per_pix = 9 * (4 * 8 + 8 * 8 + 8 * 16 + 16 * 16 + 24 * 8 + 8 * 8) + 8 * 4
    weight_bytes = sum(int(a.size) * a.dtype.itemsize for a in ins[1:])
    cost = pl.CostEstimate(
        flops=2 * B * HW * macs_per_pix,
        transcendentals=B * HW,
        bytes_accessed=2 * B * C * HW * 4 + weight_bytes,
    )

    return pl.pallas_call(
        kernel,
        out_shape=jax.ShapeDtypeStruct((B, C, HW), jnp.float32),
        grid=(B,),
        in_specs=in_specs,
        out_specs=pl.BlockSpec((1, C, HW), lambda b: (b, 0, 0)),
        compiler_params=pltpu.CompilerParams(
            dimension_semantics=("parallel",),
            vmem_limit_bytes=48 * 1024 * 1024,
        ),
        cost_estimate=cost,
    )(*ins)


def cons_module_forward(depth, nmap, params):
    """depth: (B,1,H,W); nmap: (B,H,W,3) or (B,3,H,W).  Returns (B,4,H,W)."""
    # Matches the torch layout check (nmap.size(3) == 3); ambiguous only if W == 3.
    if nmap.shape[3] == 3:
        nmap = jnp.transpose(nmap, (0, 3, 1, 2))             # -> (B,3,H,W)
    x = jnp.concatenate([depth, nmap], axis=1)               # (B,4,H,W)
    B, C, H, W = x.shape
    out_flat = _unet_fused(x.reshape(B, C, H * W), params, H, W)
    return out_flat.reshape(B, C, H, W)


# ----------------------------------------------------------------------------
# Deterministic parameter init (xavier_uniform weights, zero bias)
# ----------------------------------------------------------------------------
def _xavier_conv(key, kh, kw, cin, cout):
    fan_in, fan_out = cin * kh * kw, cout * kh * kw
    bound = math.sqrt(6.0 / (fan_in + fan_out))
    return jax.random.uniform(key, (kh, kw, cin, cout), jnp.float32, -bound, bound)


def init_params(key, base=8):
    ks = jax.random.split(key, 7)
    p = {}
    p["enc1_w1"] = _xavier_conv(ks[0], 3, 3, 4, base)
    p["enc1_b1"] = jnp.zeros((base,), jnp.float32)
    p["enc1_w2"] = _xavier_conv(ks[1], 3, 3, base, base)
    p["enc1_b2"] = jnp.zeros((base,), jnp.float32)
    p["bott_w1"] = _xavier_conv(ks[2], 3, 3, base, 2 * base)
    p["bott_b1"] = jnp.zeros((2 * base,), jnp.float32)
    p["bott_w2"] = _xavier_conv(ks[3], 3, 3, 2 * base, 2 * base)
    p["bott_b2"] = jnp.zeros((2 * base,), jnp.float32)
    p["dec1_w1"] = _xavier_conv(ks[4], 3, 3, 3 * base, base)   # Cin = [up(16), skip(8)]
    p["dec1_b1"] = jnp.zeros((base,), jnp.float32)
    p["dec1_w2"] = _xavier_conv(ks[5], 3, 3, base, base)
    p["dec1_b2"] = jnp.zeros((base,), jnp.float32)
    p["out_w"] = _xavier_conv(ks[6], 1, 1, base, 4)[0, 0]      # (base, 4)
    p["out_b"] = jnp.zeros((4,), jnp.float32)
    return p


if __name__ == "__main__":
    key = jax.random.PRNGKey(0)
    k_p, k_d, k_n = jax.random.split(key, 3)

    B, H, W = 2, 16, 16
    depth = jax.random.normal(k_d, (B, 1, H, W), dtype=jnp.float32)
    nmap = jax.random.normal(k_n, (B, H, W, 3), dtype=jnp.float32)  # channels-last

    params = init_params(k_p, base=8)

    out = jax.jit(cons_module_forward)(depth, nmap, params)
    out = jax.block_until_ready(out)

    assert out.shape == (B, 4, H, W)
    assert bool(jnp.all(jnp.isfinite(out)))
    # normal channels must be unit-norm per pixel (F.normalize semantics)
    norms = jnp.sqrt(jnp.sum(out[:, 1:] ** 2, axis=1))
    assert bool(jnp.allclose(norms, 1.0, atol=1e-4))
    print("KERNEL_OK")
</pallas_src>

<mosaic_0001>
module attributes {stable_mosaic.version = 11 : i64} {
  func.func @cons_unet_kernel(%arg0: i32, %arg1: memref<1x4x256xf32, #tpu.memory_space<vmem>>, %arg2: memref<8x36xbf16, #tpu.memory_space<vmem>>, %arg3: memref<8x1xf32, #tpu.memory_space<vmem>>, %arg4: memref<8x72xbf16, #tpu.memory_space<vmem>>, %arg5: memref<8x1xf32, #tpu.memory_space<vmem>>, %arg6: memref<16x72xbf16, #tpu.memory_space<vmem>>, %arg7: memref<16x1xf32, #tpu.memory_space<vmem>>, %arg8: memref<16x144xbf16, #tpu.memory_space<vmem>>, %arg9: memref<16x1xf32, #tpu.memory_space<vmem>>, %arg10: memref<8x216xbf16, #tpu.memory_space<vmem>>, %arg11: memref<8x1xf32, #tpu.memory_space<vmem>>, %arg12: memref<8x72xbf16, #tpu.memory_space<vmem>>, %arg13: memref<8x1xf32, #tpu.memory_space<vmem>>, %arg14: memref<4x8xbf16, #tpu.memory_space<vmem>>, %arg15: memref<4x1xf32, #tpu.memory_space<vmem>>, %arg16: memref<1x4x256xf32, #tpu.memory_space<vmem>>) attributes {dimension_semantics = [#tpu.dimension_semantics<parallel>], iteration_bounds = array<i64: 2>, scalar_prefetch = 0 : i64, scratch_operands = 0 : i64, tpu.core_type = #tpu.core_type<tc>, window_params = [{transform_indices = @transform_0, window_bounds = array<i64: 1, 4, 256>}, {pipeline_mode = #tpu.pipeline_mode<synchronous>, transform_indices = @transform_1, window_bounds = array<i64: 8, 36>}, {pipeline_mode = #tpu.pipeline_mode<synchronous>, transform_indices = @transform_2, window_bounds = array<i64: 8, 1>}, {pipeline_mode = #tpu.pipeline_mode<synchronous>, transform_indices = @transform_3, window_bounds = array<i64: 8, 72>}, {pipeline_mode = #tpu.pipeline_mode<synchronous>, transform_indices = @transform_4, window_bounds = array<i64: 8, 1>}, {pipeline_mode = #tpu.pipeline_mode<synchronous>, transform_indices = @transform_5, window_bounds = array<i64: 16, 72>}, {pipeline_mode = #tpu.pipeline_mode<synchronous>, transform_indices = @transform_6, window_bounds = array<i64: 16, 1>}, {pipeline_mode = #tpu.pipeline_mode<synchronous>, transform_indices = @transform_7, window_bounds = array<i64: 16, 144>}, {pipeline_mode = #tpu.pipeline_mode<synchronous>, transform_indices = @transform_8, window_bounds = array<i64: 16, 1>}, {pipeline_mode = #tpu.pipeline_mode<synchronous>, transform_indices = @transform_9, window_bounds = array<i64: 8, 216>}, {pipeline_mode = #tpu.pipeline_mode<synchronous>, transform_indices = @transform_10, window_bounds = array<i64: 8, 1>}, {pipeline_mode = #tpu.pipeline_mode<synchronous>, transform_indices = @transform_11, window_bounds = array<i64: 8, 72>}, {pipeline_mode = #tpu.pipeline_mode<synchronous>, transform_indices = @transform_12, window_bounds = array<i64: 8, 1>}, {pipeline_mode = #tpu.pipeline_mode<synchronous>, transform_indices = @transform_13, window_bounds = array<i64: 4, 8>}, {pipeline_mode = #tpu.pipeline_mode<synchronous>, transform_indices = @transform_14, window_bounds = array<i64: 4, 1>}, {transform_indices = @transform_15, window_bounds = array<i64: 1, 4, 256>}]} {
    %c0 = arith.constant 0 : index
    %c0_0 = arith.constant 0 : index
    %c0_1 = arith.constant 0 : index
    %0 = vector.load %arg1[%c0, %c0_0, %c0_1] : memref<1x4x256xf32, #tpu.memory_space<vmem>>, vector<1x4x256xf32>
    %1 = vector.shape_cast %0 : vector<1x4x256xf32> to vector<4x256xf32>
    %2 = tpu.iota {dimensions = array<i32: 1>} : vector<1x256xi32>
    %c4_i32 = arith.constant 4 : i32
    %3 = vector.broadcast %c4_i32 : i32 to vector<1x256xi32>
    %4 = arith.shrsi %2, %3 : vector<1x256xi32>
    %c15_i32 = arith.constant 15 : i32
    %5 = vector.broadcast %c15_i32 : i32 to vector<1x256xi32>
    %6 = arith.andi %2, %5 : vector<1x256xi32>
    %c-1_i32 = arith.constant -1 : i32
    %7 = vector.broadcast %c-1_i32 : i32 to vector<1x256xi32>
    %8 = arith.addi %4, %7 : vector<1x256xi32>
    %c-1_i32_2 = arith.constant -1 : i32
    %9 = vector.broadcast %c-1_i32_2 : i32 to vector<1x256xi32>
    %10 = arith.addi %6, %9 : vector<1x256xi32>
    %c0_i32 = arith.constant 0 : i32
    %11 = vector.broadcast %c0_i32 : i32 to vector<1x256xi32>
    %12 = arith.cmpi sge, %8, %11 : vector<1x256xi32>
    %c16_i32 = arith.constant 16 : i32
    %13 = vector.broadcast %c16_i32 : i32 to vector<1x256xi32>
    %14 = arith.cmpi slt, %8, %13 : vector<1x256xi32>
    %15 = arith.andi %12, %14 : vector<1x256xi1>
    %c0_i32_3 = arith.constant 0 : i32
    %16 = vector.broadcast %c0_i32_3 : i32 to vector<1x256xi32>
    %17 = arith.cmpi sge, %10, %16 : vector<1x256xi32>
    %18 = arith.andi %15, %17 : vector<1x256xi1>
    %c16_i32_4 = arith.constant 16 : i32
    %19 = vector.broadcast %c16_i32_4 : i32 to vector<1x256xi32>
    %20 = arith.cmpi slt, %10, %19 : vector<1x256xi32>
    %21 = arith.andi %18, %20 : vector<1x256xi1>
    %22 = arith.extui %21 : vector<1x256xi1> to vector<1x256xi32>
    %23 = arith.sitofp %22 : vector<1x256xi32> to vector<1x256xf32>
    %c-1_i32_5 = arith.constant -1 : i32
    %24 = vector.broadcast %c-1_i32_5 : i32 to vector<1x256xi32>
    %25 = arith.addi %4, %24 : vector<1x256xi32>
    %c0_i32_6 = arith.constant 0 : i32
    %26 = vector.broadcast %c0_i32_6 : i32 to vector<1x256xi32>
    %27 = arith.addi %6, %26 : vector<1x256xi32>
    %c0_i32_7 = arith.constant 0 : i32
    %28 = vector.broadcast %c0_i32_7 : i32 to vector<1x256xi32>
    %29 = arith.cmpi sge, %25, %28 : vector<1x256xi32>
    %c16_i32_8 = arith.constant 16 : i32
    %30 = vector.broadcast %c16_i32_8 : i32 to vector<1x256xi32>
    %31 = arith.cmpi slt, %25, %30 : vector<1x256xi32>
    %32 = arith.andi %29, %31 : vector<1x256xi1>
    %c0_i32_9 = arith.constant 0 : i32
    %33 = vector.broadcast %c0_i32_9 : i32 to vector<1x256xi32>
    %34 = arith.cmpi sge, %27, %33 : vector<1x256xi32>
    %35 = arith.andi %32, %34 : vector<1x256xi1>
    %c16_i32_10 = arith.constant 16 : i32
    %36 = vector.broadcast %c16_i32_10 : i32 to vector<1x256xi32>
    %37 = arith.cmpi slt, %27, %36 : vector<1x256xi32>
    %38 = arith.andi %35, %37 : vector<1x256xi1>
    %39 = arith.extui %38 : vector<1x256xi1> to vector<1x256xi32>
    %40 = arith.sitofp %39 : vector<1x256xi32> to vector<1x256xf32>
    %c-1_i32_11 = arith.constant -1 : i32
    %41 = vector.broadcast %c-1_i32_11 : i32 to vector<1x256xi32>
    %42 = arith.addi %4, %41 : vector<1x256xi32>
    %c1_i32 = arith.constant 1 : i32
    %43 = vector.broadcast %c1_i32 : i32 to vector<1x256xi32>
    %44 = arith.addi %6, %43 : vector<1x256xi32>
    %c0_i32_12 = arith.constant 0 : i32
    %45 = vector.broadcast %c0_i32_12 : i32 to vector<1x256xi32>
    %46 = arith.cmpi sge, %42, %45 : vector<1x256xi32>
    %c16_i32_13 = arith.constant 16 : i32
    %47 = vector.broadcast %c16_i32_13 : i32 to vector<1x256xi32>
    %48 = arith.cmpi slt, %42, %47 : vector<1x256xi32>
    %49 = arith.andi %46, %48 : vector<1x256xi1>
    %c0_i32_14 = arith.constant 0 : i32
    %50 = vector.broadcast %c0_i32_14 : i32 to vector<1x256xi32>
    %51 = arith.cmpi sge, %44, %50 : vector<1x256xi32>
    %52 = arith.andi %49, %51 : vector<1x256xi1>
    %c16_i32_15 = arith.constant 16 : i32
    %53 = vector.broadcast %c16_i32_15 : i32 to vector<1x256xi32>
    %54 = arith.cmpi slt, %44, %53 : vector<1x256xi32>
    %55 = arith.andi %52, %54 : vector<1x256xi1>
    %56 = arith.extui %55 : vector<1x256xi1> to vector<1x256xi32>
    %57 = arith.sitofp %56 : vector<1x256xi32> to vector<1x256xf32>
    %c0_i32_16 = arith.constant 0 : i32
    %58 = vector.broadcast %c0_i32_16 : i32 to vector<1x256xi32>
    %59 = arith.addi %4, %58 : vector<1x256xi32>
    %c-1_i32_17 = arith.constant -1 : i32
    %60 = vector.broadcast %c-1_i32_17 : i32 to vector<1x256xi32>
    %61 = arith.addi %6, %60 : vector<1x256xi32>
    %c0_i32_18 = arith.constant 0 : i32
    %62 = vector.broadcast %c0_i32_18 : i32 to vector<1x256xi32>
    %63 = arith.cmpi sge, %59, %62 : vector<1x256xi32>
    %c16_i32_19 = arith.constant 16 : i32
    %64 = vector.broadcast %c16_i32_19 : i32 to vector<1x256xi32>
    %65 = arith.cmpi slt, %59, %64 : vector<1x256xi32>
    %66 = arith.andi %63, %65 : vector<1x256xi1>
    %c0_i32_20 = arith.constant 0 : i32
    %67 = vector.broadcast %c0_i32_20 : i32 to vector<1x256xi32>
    %68 = arith.cmpi sge, %61, %67 : vector<1x256xi32>
    %69 = arith.andi %66, %68 : vector<1x256xi1>
    %c16_i32_21 = arith.constant 16 : i32
    %70 = vector.broadcast %c16_i32_21 : i32 to vector<1x256xi32>
    %71 = arith.cmpi slt, %61, %70 : vector<1x256xi32>
    %72 = arith.andi %69, %71 : vector<1x256xi1>
    %73 = arith.extui %72 : vector<1x256xi1> to vector<1x256xi32>
    %74 = arith.sitofp %73 : vector<1x256xi32> to vector<1x256xf32>
    %c0_i32_22 = arith.constant 0 : i32
    %75 = vector.broadcast %c0_i32_22 : i32 to vector<1x256xi32>
    %76 = arith.addi %4, %75 : vector<1x256xi32>
    %c1_i32_23 = arith.constant 1 : i32
    %77 = vector.broadcast %c1_i32_23 : i32 to vector<1x256xi32>
    %78 = arith.addi %6, %77 : vector<1x256xi32>
    %c0_i32_24 = arith.constant 0 : i32
    %79 = vector.broadcast %c0_i32_24 : i32 to vector<1x256xi32>
    %80 = arith.cmpi sge, %76, %79 : vector<1x256xi32>
    %c16_i32_25 = arith.constant 16 : i32
    %81 = vector.broadcast %c16_i32_25 : i32 to vector<1x256xi32>
    %82 = arith.cmpi slt, %76, %81 : vector<1x256xi32>
    %83 = arith.andi %80, %82 : vector<1x256xi1>
    %c0_i32_26 = arith.constant 0 : i32
    %84 = vector.broadcast %c0_i32_26 : i32 to vector<1x256xi32>
    %85 = arith.cmpi sge, %78, %84 : vector<1x256xi32>
    %86 = arith.andi %83, %85 : vector<1x256xi1>
    %c16_i32_27 = arith.constant 16 : i32
    %87 = vector.broadcast %c16_i32_27 : i32 to vector<1x256xi32>
    %88 = arith.cmpi slt, %78, %87 : vector<1x256xi32>
    %89 = arith.andi %86, %88 : vector<1x256xi1>
    %90 = arith.extui %89 : vector<1x256xi1> to vector<1x256xi32>
    %91 = arith.sitofp %90 : vector<1x256xi32> to vector<1x256xf32>
    %c1_i32_28 = arith.constant 1 : i32
    %92 = vector.broadcast %c1_i32_28 : i32 to vector<1x256xi32>
    %93 = arith.addi %4, %92 : vector<1x256xi32>
    %c-1_i32_29 = arith.constant -1 : i32
    %94 = vector.broadcast %c-1_i32_29 : i32 to vector<1x256xi32>
    %95 = arith.addi %6, %94 : vector<1x256xi32>
    %c0_i32_30 = arith.constant 0 : i32
    %96 = vector.broadcast %c0_i32_30 : i32 to vector<1x256xi32>
    %97 = arith.cmpi sge, %93, %96 : vector<1x256xi32>
    %c16_i32_31 = arith.constant 16 : i32
    %98 = vector.broadcast %c16_i32_31 : i32 to vector<1x256xi32>
    %99 = arith.cmpi slt, %93, %98 : vector<1x256xi32>
    %100 = arith.andi %97, %99 : vector<1x256xi1>
    %c0_i32_32 = arith.constant 0 : i32
    %101 = vector.broadcast %c0_i32_32 : i32 to vector<1x256xi32>
    %102 = arith.cmpi sge, %95, %101 : vector<1x256xi32>
    %103 = arith.andi %100, %102 : vector<1x256xi1>
    %c16_i32_33 = arith.constant 16 : i32
    %104 = vector.broadcast %c16_i32_33 : i32 to vector<1x256xi32>
    %105 = arith.cmpi slt, %95, %104 : vector<1x256xi32>
    %106 = arith.andi %103, %105 : vector<1x256xi1>
    %107 = arith.extui %106 : vector<1x256xi1> to vector<1x256xi32>
    %108 = arith.sitofp %107 : vector<1x256xi32> to vector<1x256xf32>
    %c1_i32_34 = arith.constant 1 : i32
    %109 = vector.broadcast %c1_i32_34 : i32 to vector<1x256xi32>
    %110 = arith.addi %4, %109 : vector<1x256xi32>
    %c0_i32_35 = arith.constant 0 : i32
    %111 = vector.broadcast %c0_i32_35 : i32 to vector<1x256xi32>
    %112 = arith.addi %6, %111 : vector<1x256xi32>
    %c0_i32_36 = arith.constant 0 : i32
    %113 = vector.broadcast %c0_i32_36 : i32 to vector<1x256xi32>
    %114 = arith.cmpi sge, %110, %113 : vector<1x256xi32>
    %c16_i32_37 = arith.constant 16 : i32
    %115 = vector.broadcast %c16_i32_37 : i32 to vector<1x256xi32>
    %116 = arith.cmpi slt, %110, %115 : vector<1x256xi32>
    %117 = arith.andi %114, %116 : vector<1x256xi1>
    %c0_i32_38 = arith.constant 0 : i32
    %118 = vector.broadcast %c0_i32_38 : i32 to vector<1x256xi32>
    %119 = arith.cmpi sge, %112, %118 : vector<1x256xi32>
    %120 = arith.andi %117, %119 : vector<1x256xi1>
    %c16_i32_39 = arith.constant 16 : i32
    %121 = vector.broadcast %c16_i32_39 : i32 to vector<1x256xi32>
    %122 = arith.cmpi slt, %112, %121 : vector<1x256xi32>
    %123 = arith.andi %120, %122 : vector<1x256xi1>
    %124 = arith.extui %123 : vector<1x256xi1> to vector<1x256xi32>
    %125 = arith.sitofp %124 : vector<1x256xi32> to vector<1x256xf32>
    %c1_i32_40 = arith.constant 1 : i32
    %126 = vector.broadcast %c1_i32_40 : i32 to vector<1x256xi32>
    %127 = arith.addi %4, %126 : vector<1x256xi32>
    %c1_i32_41 = arith.constant 1 : i32
    %128 = vector.broadcast %c1_i32_41 : i32 to vector<1x256xi32>
    %129 = arith.addi %6, %128 : vector<1x256xi32>
    %c0_i32_42 = arith.constant 0 : i32
    %130 = vector.broadcast %c0_i32_42 : i32 to vector<1x256xi32>
    %131 = arith.cmpi sge, %127, %130 : vector<1x256xi32>
    %c16_i32_43 = arith.constant 16 : i32
    %132 = vector.broadcast %c16_i32_43 : i32 to vector<1x256xi32>
    %133 = arith.cmpi slt, %127, %132 : vector<1x256xi32>
    %134 = arith.andi %131, %133 : vector<1x256xi1>
    %c0_i32_44 = arith.constant 0 : i32
    %135 = vector.broadcast %c0_i32_44 : i32 to vector<1x256xi32>
    %136 = arith.cmpi sge, %129, %135 : vector<1x256xi32>
    %137 = arith.andi %134, %136 : vector<1x256xi1>
    %c16_i32_45 = arith.constant 16 : i32
    %138 = vector.broadcast %c16_i32_45 : i32 to vector<1x256xi32>
    %139 = arith.cmpi slt, %129, %138 : vector<1x256xi32>
    %140 = arith.andi %137, %139 : vector<1x256xi1>
    %141 = arith.extui %140 : vector<1x256xi1> to vector<1x256xi32>
    %142 = arith.sitofp %141 : vector<1x256xi32> to vector<1x256xf32>
    %c-2_i32 = arith.constant -2 : i32
    %143 = vector.broadcast %c-2_i32 : i32 to vector<1x256xi32>
    %144 = arith.addi %4, %143 : vector<1x256xi32>
    %c-2_i32_46 = arith.constant -2 : i32
    %145 = vector.broadcast %c-2_i32_46 : i32 to vector<1x256xi32>
    %146 = arith.addi %6, %145 : vector<1x256xi32>
    %c0_i32_47 = arith.constant 0 : i32
    %147 = vector.broadcast %c0_i32_47 : i32 to vector<1x256xi32>
    %148 = arith.cmpi sge, %144, %147 : vector<1x256xi32>
    %c16_i32_48 = arith.constant 16 : i32
    %149 = vector.broadcast %c16_i32_48 : i32 to vector<1x256xi32>
    %150 = arith.cmpi slt, %144, %149 : vector<1x256xi32>
    %151 = arith.andi %148, %150 : vector<1x256xi1>
    %c0_i32_49 = arith.constant 0 : i32
    %152 = vector.broadcast %c0_i32_49 : i32 to vector<1x256xi32>
    %153 = arith.cmpi sge, %146, %152 : vector<1x256xi32>
    %154 = arith.andi %151, %153 : vector<1x256xi1>
    %c16_i32_50 = arith.constant 16 : i32
    %155 = vector.broadcast %c16_i32_50 : i32 to vector<1x256xi32>
    %156 = arith.cmpi slt, %146, %155 : vector<1x256xi32>
    %157 = arith.andi %154, %156 : vector<1x256xi1>
    %158 = arith.extui %157 : vector<1x256xi1> to vector<1x256xi32>
    %159 = arith.sitofp %158 : vector<1x256xi32> to vector<1x256xf32>
    %c-2_i32_51 = arith.constant -2 : i32
    %160 = vector.broadcast %c-2_i32_51 : i32 to vector<1x256xi32>
    %161 = arith.addi %4, %160 : vector<1x256xi32>
    %c0_i32_52 = arith.constant 0 : i32
    %162 = vector.broadcast %c0_i32_52 : i32 to vector<1x256xi32>
    %163 = arith.addi %6, %162 : vector<1x256xi32>
    %c0_i32_53 = arith.constant 0 : i32
    %164 = vector.broadcast %c0_i32_53 : i32 to vector<1x256xi32>
    %165 = arith.cmpi sge, %161, %164 : vector<1x256xi32>
    %c16_i32_54 = arith.constant 16 : i32
    %166 = vector.broadcast %c16_i32_54 : i32 to vector<1x256xi32>
    %167 = arith.cmpi slt, %161, %166 : vector<1x256xi32>
    %168 = arith.andi %165, %167 : vector<1x256xi1>
    %c0_i32_55 = arith.constant 0 : i32
    %169 = vector.broadcast %c0_i32_55 : i32 to vector<1x256xi32>
    %170 = arith.cmpi sge, %163, %169 : vector<1x256xi32>
    %171 = arith.andi %168, %170 : vector<1x256xi1>
    %c16_i32_56 = arith.constant 16 : i32
    %172 = vector.broadcast %c16_i32_56 : i32 to vector<1x256xi32>
    %173 = arith.cmpi slt, %163, %172 : vector<1x256xi32>
    %174 = arith.andi %171, %173 : vector<1x256xi1>
    %175 = arith.extui %174 : vector<1x256xi1> to vector<1x256xi32>
    %176 = arith.sitofp %175 : vector<1x256xi32> to vector<1x256xf32>
    %c-2_i32_57 = arith.constant -2 : i32
    %177 = vector.broadcast %c-2_i32_57 : i32 to vector<1x256xi32>
    %178 = arith.addi %4, %177 : vector<1x256xi32>
    %c2_i32 = arith.constant 2 : i32
    %179 = vector.broadcast %c2_i32 : i32 to vector<1x256xi32>
    %180 = arith.addi %6, %179 : vector<1x256xi32>
    %c0_i32_58 = arith.constant 0 : i32
    %181 = vector.broadcast %c0_i32_58 : i32 to vector<1x256xi32>
    %182 = arith.cmpi sge, %178, %181 : vector<1x256xi32>
    %c16_i32_59 = arith.constant 16 : i32
    %183 = vector.broadcast %c16_i32_59 : i32 to vector<1x256xi32>
    %184 = arith.cmpi slt, %178, %183 : vector<1x256xi32>
    %185 = arith.andi %182, %184 : vector<1x256xi1>
    %c0_i32_60 = arith.constant 0 : i32
    %186 = vector.broadcast %c0_i32_60 : i32 to vector<1x256xi32>
    %187 = arith.cmpi sge, %180, %186 : vector<1x256xi32>
    %188 = arith.andi %185, %187 : vector<1x256xi1>
    %c16_i32_61 = arith.constant 16 : i32
    %189 = vector.broadcast %c16_i32_61 : i32 to vector<1x256xi32>
    %190 = arith.cmpi slt, %180, %189 : vector<1x256xi32>
    %191 = arith.andi %188, %190 : vector<1x256xi1>
    %192 = arith.extui %191 : vector<1x256xi1> to vector<1x256xi32>
    %193 = arith.sitofp %192 : vector<1x256xi32> to vector<1x256xf32>
    %c0_i32_62 = arith.constant 0 : i32
    %194 = vector.broadcast %c0_i32_62 : i32 to vector<1x256xi32>
    %195 = arith.addi %4, %194 : vector<1x256xi32>
    %c-2_i32_63 = arith.constant -2 : i32
    %196 = vector.broadcast %c-2_i32_63 : i32 to vector<1x256xi32>
    %197 = arith.addi %6, %196 : vector<1x256xi32>
    %c0_i32_64 = arith.constant 0 : i32
    %198 = vector.broadcast %c0_i32_64 : i32 to vector<1x256xi32>
    %199 = arith.cmpi sge, %195, %198 : vector<1x256xi32>
    %c16_i32_65 = arith.constant 16 : i32
    %200 = vector.broadcast %c16_i32_65 : i32 to vector<1x256xi32>
    %201 = arith.cmpi slt, %195, %200 : vector<1x256xi32>
    %202 = arith.andi %199, %201 : vector<1x256xi1>
    %c0_i32_66 = arith.constant 0 : i32
    %203 = vector.broadcast %c0_i32_66 : i32 to vector<1x256xi32>
    %204 = arith.cmpi sge, %197, %203 : vector<1x256xi32>
    %205 = arith.andi %202, %204 : vector<1x256xi1>
    %c16_i32_67 = arith.constant 16 : i32
    %206 = vector.broadcast %c16_i32_67 : i32 to vector<1x256xi32>
    %207 = arith.cmpi slt, %197, %206 : vector<1x256xi32>
    %208 = arith.andi %205, %207 : vector<1x256xi1>
    %209 = arith.extui %208 : vector<1x256xi1> to vector<1x256xi32>
    %210 = arith.sitofp %209 : vector<1x256xi32> to vector<1x256xf32>
    %c0_i32_68 = arith.constant 0 : i32
    %211 = vector.broadcast %c0_i32_68 : i32 to vector<1x256xi32>
    %212 = arith.addi %4, %211 : vector<1x256xi32>
    %c2_i32_69 = arith.constant 2 : i32
    %213 = vector.broadcast %c2_i32_69 : i32 to vector<1x256xi32>
    %214 = arith.addi %6, %213 : vector<1x256xi32>
    %c0_i32_70 = arith.constant 0 : i32
    %215 = vector.broadcast %c0_i32_70 : i32 to vector<1x256xi32>
    %216 = arith.cmpi sge, %212, %215 : vector<1x256xi32>
    %c16_i32_71 = arith.constant 16 : i32
    %217 = vector.broadcast %c16_i32_71 : i32 to vector<1x256xi32>
    %218 = arith.cmpi slt, %212, %217 : vector<1x256xi32>
    %219 = arith.andi %216, %218 : vector<1x256xi1>
    %c0_i32_72 = arith.constant 0 : i32
    %220 = vector.broadcast %c0_i32_72 : i32 to vector<1x256xi32>
    %221 = arith.cmpi sge, %214, %220 : vector<1x256xi32>
    %222 = arith.andi %219, %221 : vector<1x256xi1>
    %c16_i32_73 = arith.constant 16 : i32
    %223 = vector.broadcast %c16_i32_73 : i32 to vector<1x256xi32>
    %224 = arith.cmpi slt, %214, %223 : vector<1x256xi32>
    %225 = arith.andi %222, %224 : vector<1x256xi1>
    %226 = arith.extui %225 : vector<1x256xi1> to vector<1x256xi32>
    %227 = arith.sitofp %226 : vector<1x256xi32> to vector<1x256xf32>
    %c2_i32_74 = arith.constant 2 : i32
    %228 = vector.broadcast %c2_i32_74 : i32 to vector<1x256xi32>
    %229 = arith.addi %4, %228 : vector<1x256xi32>
    %c-2_i32_75 = arith.constant -2 : i32
    %230 = vector.broadcast %c-2_i32_75 : i32 to vector<1x256xi32>
    %231 = arith.addi %6, %230 : vector<1x256xi32>
    %c0_i32_76 = arith.constant 0 : i32
    %232 = vector.broadcast %c0_i32_76 : i32 to vector<1x256xi32>
    %233 = arith.cmpi sge, %229, %232 : vector<1x256xi32>
    %c16_i32_77 = arith.constant 16 : i32
    %234 = vector.broadcast %c16_i32_77 : i32 to vector<1x256xi32>
    %235 = arith.cmpi slt, %229, %234 : vector<1x256xi32>
    %236 = arith.andi %233, %235 : vector<1x256xi1>
    %c0_i32_78 = arith.constant 0 : i32
    %237 = vector.broadcast %c0_i32_78 : i32 to vector<1x256xi32>
    %238 = arith.cmpi sge, %231, %237 : vector<1x256xi32>
    %239 = arith.andi %236, %238 : vector<1x256xi1>
    %c16_i32_79 = arith.constant 16 : i32
    %240 = vector.broadcast %c16_i32_79 : i32 to vector<1x256xi32>
    %241 = arith.cmpi slt, %231, %240 : vector<1x256xi32>
    %242 = arith.andi %239, %241 : vector<1x256xi1>
    %243 = arith.extui %242 : vector<1x256xi1> to vector<1x256xi32>
    %244 = arith.sitofp %243 : vector<1x256xi32> to vector<1x256xf32>
    %c2_i32_80 = arith.constant 2 : i32
    %245 = vector.broadcast %c2_i32_80 : i32 to vector<1x256xi32>
    %246 = arith.addi %4, %245 : vector<1x256xi32>
    %c0_i32_81 = arith.constant 0 : i32
    %247 = vector.broadcast %c0_i32_81 : i32 to vector<1x256xi32>
    %248 = arith.addi %6, %247 : vector<1x256xi32>
    %c0_i32_82 = arith.constant 0 : i32
    %249 = vector.broadcast %c0_i32_82 : i32 to vector<1x256xi32>
    %250 = arith.cmpi sge, %246, %249 : vector<1x256xi32>
    %c16_i32_83 = arith.constant 16 : i32
    %251 = vector.broadcast %c16_i32_83 : i32 to vector<1x256xi32>
    %252 = arith.cmpi slt, %246, %251 : vector<1x256xi32>
    %253 = arith.andi %250, %252 : vector<1x256xi1>
    %c0_i32_84 = arith.constant 0 : i32
    %254 = vector.broadcast %c0_i32_84 : i32 to vector<1x256xi32>
    %255 = arith.cmpi sge, %248, %254 : vector<1x256xi32>
    %256 = arith.andi %253, %255 : vector<1x256xi1>
    %c16_i32_85 = arith.constant 16 : i32
    %257 = vector.broadcast %c16_i32_85 : i32 to vector<1x256xi32>
    %258 = arith.cmpi slt, %248, %257 : vector<1x256xi32>
    %259 = arith.andi %256, %258 : vector<1x256xi1>
    %260 = arith.extui %259 : vector<1x256xi1> to vector<1x256xi32>
    %261 = arith.sitofp %260 : vector<1x256xi32> to vector<1x256xf32>
    %c2_i32_86 = arith.constant 2 : i32
    %262 = vector.broadcast %c2_i32_86 : i32 to vector<1x256xi32>
    %263 = arith.addi %4, %262 : vector<1x256xi32>
    %c2_i32_87 = arith.constant 2 : i32
    %264 = vector.broadcast %c2_i32_87 : i32 to vector<1x256xi32>
    %265 = arith.addi %6, %264 : vector<1x256xi32>
    %c0_i32_88 = arith.constant 0 : i32
    %266 = vector.broadcast %c0_i32_88 : i32 to vector<1x256xi32>
    %267 = arith.cmpi sge, %263, %266 : vector<1x256xi32>
    %c16_i32_89 = arith.constant 16 : i32
    %268 = vector.broadcast %c16_i32_89 : i32 to vector<1x256xi32>
    %269 = arith.cmpi slt, %263, %268 : vector<1x256xi32>
    %270 = arith.andi %267, %269 : vector<1x256xi1>
    %c0_i32_90 = arith.constant 0 : i32
    %271 = vector.broadcast %c0_i32_90 : i32 to vector<1x256xi32>
    %272 = arith.cmpi sge, %265, %271 : vector<1x256xi32>
    %273 = arith.andi %270, %272 : vector<1x256xi1>
    %c16_i32_91 = arith.constant 16 : i32
    %274 = vector.broadcast %c16_i32_91 : i32 to vector<1x256xi32>
    %275 = arith.cmpi slt, %265, %274 : vector<1x256xi32>
    %276 = arith.andi %273, %275 : vector<1x256xi1>
    %277 = arith.extui %276 : vector<1x256xi1> to vector<1x256xi32>
    %278 = arith.sitofp %277 : vector<1x256xi32> to vector<1x256xf32>
    %c1_i32_92 = arith.constant 1 : i32
    %279 = vector.broadcast %c1_i32_92 : i32 to vector<1x256xi32>
    %280 = arith.andi %6, %279 : vector<1x256xi32>
    %c0_i32_93 = arith.constant 0 : i32
    %281 = vector.broadcast %c0_i32_93 : i32 to vector<1x256xi32>
    %282 = arith.cmpi eq, %280, %281 : vector<1x256xi32>
    %c1_i32_94 = arith.constant 1 : i32
    %283 = vector.broadcast %c1_i32_94 : i32 to vector<1x256xi32>
    %284 = arith.andi %4, %283 : vector<1x256xi32>
    %c0_i32_95 = arith.constant 0 : i32
    %285 = vector.broadcast %c0_i32_95 : i32 to vector<1x256xi32>
    %286 = arith.cmpi eq, %284, %285 : vector<1x256xi32>
    %c16_i32_96 = arith.constant 16 : i32
    %287 = tpu.dynamic_rotate %1 by %c16_i32_96 dim 1 : vector<4x256xf32>, i32 -> vector<4x256xf32>
    %c240_i32 = arith.constant 240 : i32
    %288 = tpu.dynamic_rotate %1 by %c240_i32 dim 1 : vector<4x256xf32>, i32 -> vector<4x256xf32>
    %c1_i32_97 = arith.constant 1 : i32
    %289 = tpu.dynamic_rotate %287 by %c1_i32_97 dim 1 : vector<4x256xf32>, i32 -> vector<4x256xf32>
    %290 = vector.broadcast %23 : vector<1x256xf32> to vector<4x256xf32>
    %291 = arith.mulf %289, %290 : vector<4x256xf32>
    %292 = vector.broadcast %40 : vector<1x256xf32> to vector<4x256xf32>
    %293 = arith.mulf %287, %292 : vector<4x256xf32>
    %c255_i32 = arith.constant 255 : i32
    %294 = tpu.dynamic_rotate %287 by %c255_i32 dim 1 : vector<4x256xf32>, i32 -> vector<4x256xf32>
    %295 = vector.broadcast %57 : vector<1x256xf32> to vector<4x256xf32>
    %296 = arith.mulf %294, %295 : vector<4x256xf32>
    %c1_i32_98 = arith.constant 1 : i32
    %297 = tpu.dynamic_rotate %1 by %c1_i32_98 dim 1 : vector<4x256xf32>, i32 -> vector<4x256xf32>
    %298 = vector.broadcast %74 : vector<1x256xf32> to vector<4x256xf32>
    %299 = arith.mulf %297, %298 : vector<4x256xf32>
    %c255_i32_99 = arith.constant 255 : i32
    %300 = tpu.dynamic_rotate %1 by %c255_i32_99 dim 1 : vector<4x256xf32>, i32 -> vector<4x256xf32>
    %301 = vector.broadcast %91 : vector<1x256xf32> to vector<4x256xf32>
    %302 = arith.mulf %300, %301 : vector<4x256xf32>
    %c1_i32_100 = arith.constant 1 : i32
    %303 = tpu.dynamic_rotate %288 by %c1_i32_100 dim 1 : vector<4x256xf32>, i32 -> vector<4x256xf32>
    %304 = vector.broadcast %108 : vector<1x256xf32> to vector<4x256xf32>
    %305 = arith.mulf %303, %304 : vector<4x256xf32>
    %306 = vector.broadcast %125 : vector<1x256xf32> to vector<4x256xf32>
    %307 = arith.mulf %288, %306 : vector<4x256xf32>
    %c255_i32_101 = arith.constant 255 : i32
    %308 = tpu.dynamic_rotate %288 by %c255_i32_101 dim 1 : vector<4x256xf32>, i32 -> vector<4x256xf32>
    %309 = vector.broadcast %142 : vector<1x256xf32> to vector<4x256xf32>
    %310 = arith.mulf %308, %309 : vector<4x256xf32>
    %311 = tpu.concatenate %291, %293, %296, %299, %1, %302, %305, %307, %310 in 0 : vector<4x256xf32>, vector<4x256xf32>, vector<4x256xf32>, vector<4x256xf32>, vector<4x256xf32>, vector<4x256xf32>, vector<4x256xf32>, vector<4x256xf32>, vector<4x256xf32> -> vector<36x256xf32>
    %312 = arith.truncf %311 : vector<36x256xf32> to vector<36x256xbf16>
    %c0_102 = arith.constant 0 : index
    %c0_103 = arith.constant 0 : index
    %313 = vector.load %arg2[%c0_102, %c0_103] : memref<8x36xbf16, #tpu.memory_space<vmem>>, vector<8x36xbf16>
    %cst = arith.constant dense<0.000000e+00> : vector<8x256xf32>
    %314 = tpu.matmul %313, %312, %cst {dimension_numbers = #tpu.dot_dimension_numbers<[1], [0], [0], [1], [0, 0, 1, 1], [], []>} : vector<8x36xbf16>, vector<36x256xbf16>, vector<8x256xf32> -> vector<8x256xf32>
    %c0_104 = arith.constant 0 : index
    %c0_105 = arith.constant 0 : index
    %315 = vector.load %arg3[%c0_104, %c0_105] : memref<8x1xf32, #tpu.memory_space<vmem>>, vector<8x1xf32>
    %316 = vector.broadcast %315 : vector<8x1xf32> to vector<8x256xf32>
    %317 = arith.addf %314, %316 : vector<8x256xf32>
    %cst_106 = arith.constant 0.000000e+00 : f32
    %318 = vector.broadcast %cst_106 : f32 to vector<8x256xf32>
    %319 = arith.maximumf %317, %318 : vector<8x256xf32>
    %c16_i32_107 = arith.constant 16 : i32
    %320 = tpu.dynamic_rotate %319 by %c16_i32_107 dim 1 : vector<8x256xf32>, i32 -> vector<8x256xf32>
    %c240_i32_108 = arith.constant 240 : i32
    %321 = tpu.dynamic_rotate %319 by %c240_i32_108 dim 1 : vector<8x256xf32>, i32 -> vector<8x256xf32>
    %c1_i32_109 = arith.constant 1 : i32
    %322 = tpu.dynamic_rotate %320 by %c1_i32_109 dim 1 : vector<8x256xf32>, i32 -> vector<8x256xf32>
    %323 = vector.broadcast %23 : vector<1x256xf32> to vector<8x256xf32>
    %324 = arith.mulf %322, %323 : vector<8x256xf32>
    %325 = vector.broadcast %40 : vector<1x256xf32> to vector<8x256xf32>
    %326 = arith.mulf %320, %325 : vector<8x256xf32>
    %c255_i32_110 = arith.constant 255 : i32
    %327 = tpu.dynamic_rotate %320 by %c255_i32_110 dim 1 : vector<8x256xf32>, i32 -> vector<8x256xf32>
    %328 = vector.broadcast %57 : vector<1x256xf32> to vector<8x256xf32>
    %329 = arith.mulf %327, %328 : vector<8x256xf32>
    %c1_i32_111 = arith.constant 1 : i32
    %330 = tpu.dynamic_rotate %319 by %c1_i32_111 dim 1 : vector<8x256xf32>, i32 -> vector<8x256xf32>
    %331 = vector.broadcast %74 : vector<1x256xf32> to vector<8x256xf32>
    %332 = arith.mulf %330, %331 : vector<8x256xf32>
    %c255_i32_112 = arith.constant 255 : i32
    %333 = tpu.dynamic_rotate %319 by %c255_i32_112 dim 1 : vector<8x256xf32>, i32 -> vector<8x256xf32>
    %334 = vector.broadcast %91 : vector<1x256xf32> to vector<8x256xf32>
    %335 = arith.mulf %333, %334 : vector<8x256xf32>
    %c1_i32_113 = arith.constant 1 : i32
    %336 = tpu.dynamic_rotate %321 by %c1_i32_113 dim 1 : vector<8x256xf32>, i32 -> vector<8x256xf32>
    %337 = vector.broadcast %108 : vector<1x256xf32> to vector<8x256xf32>
    %338 = arith.mulf %336, %337 : vector<8x256xf32>
    %339 = vector.broadcast %125 : vector<1x256xf32> to vector<8x256xf32>
    %340 = arith.mulf %321, %339 : vector<8x256xf32>
    %c255_i32_114 = arith.constant 255 : i32
    %341 = tpu.dynamic_rotate %321 by %c255_i32_114 dim 1 : vector<8x256xf32>, i32 -> vector<8x256xf32>
    %342 = vector.broadcast %142 : vector<1x256xf32> to vector<8x256xf32>
    %343 = arith.mulf %341, %342 : vector<8x256xf32>
    %344 = tpu.concatenate %324, %326, %329, %332, %319, %335, %338, %340, %343 in 0 : vector<8x256xf32>, vector<8x256xf32>, vector<8x256xf32>, vector<8x256xf32>, vector<8x256xf32>, vector<8x256xf32>, vector<8x256xf32>, vector<8x256xf32>, vector<8x256xf32> -> vector<72x256xf32>
    %345 = arith.truncf %344 : vector<72x256xf32> to vector<72x256xbf16>
    %c0_115 = arith.constant 0 : index
    %c0_116 = arith.constant 0 : index
    %346 = vector.load %arg4[%c0_115, %c0_116] : memref<8x72xbf16, #tpu.memory_space<vmem>>, vector<8x72xbf16>
    %cst_117 = arith.constant dense<0.000000e+00> : vector<8x256xf32>
    %347 = tpu.matmul %346, %345, %cst_117 {dimension_numbers = #tpu.dot_dimension_numbers<[1], [0], [0], [1], [0, 0, 1, 1], [], []>} : vector<8x72xbf16>, vector<72x256xbf16>, vector<8x256xf32> -> vector<8x256xf32>
    %c0_118 = arith.constant 0 : index
    %c0_119 = arith.constant 0 : index
    %348 = vector.load %arg5[%c0_118, %c0_119] : memref<8x1xf32, #tpu.memory_space<vmem>>, vector<8x1xf32>
    %349 = vector.broadcast %348 : vector<8x1xf32> to vector<8x256xf32>
    %350 = arith.addf %347, %349 : vector<8x256xf32>
    %cst_120 = arith.constant 0.000000e+00 : f32
    %351 = vector.broadcast %cst_120 : f32 to vector<8x256xf32>
    %352 = arith.maximumf %350, %351 : vector<8x256xf32>
    %c255_i32_121 = arith.constant 255 : i32
    %353 = tpu.dynamic_rotate %352 by %c255_i32_121 dim 1 : vector<8x256xf32>, i32 -> vector<8x256xf32>
    %c1_i32_122 = arith.constant 1 : i32
    %354 = tpu.dynamic_rotate %352 by %c1_i32_122 dim 1 : vector<8x256xf32>, i32 -> vector<8x256xf32>
    %355 = vector.shape_cast %282 : vector<1x256xi1> to vector<1x256xi1>
    %356 = vector.broadcast %355 : vector<1x256xi1> to vector<8x256xi1>
    %357 = arith.select %356, %353, %354 : vector<8x256xi1>, vector<8x256xf32>
    %358 = arith.maximumf %352, %357 : vector<8x256xf32>
    %c240_i32_123 = arith.constant 240 : i32
    %359 = tpu.dynamic_rotate %358 by %c240_i32_123 dim 1 : vector<8x256xf32>, i32 -> vector<8x256xf32>
    %c16_i32_124 = arith.constant 16 : i32
    %360 = tpu.dynamic_rotate %358 by %c16_i32_124 dim 1 : vector<8x256xf32>, i32 -> vector<8x256xf32>
    %361 = vector.shape_cast %286 : vector<1x256xi1> to vector<1x256xi1>
    %362 = vector.broadcast %361 : vector<1x256xi1> to vector<8x256xi1>
    %363 = arith.select %362, %359, %360 : vector<8x256xi1>, vector<8x256xf32>
    %364 = arith.maximumf %358, %363 : vector<8x256xf32>
    %c32_i32 = arith.constant 32 : i32
    %365 = tpu.dynamic_rotate %364 by %c32_i32 dim 1 : vector<8x256xf32>, i32 -> vector<8x256xf32>
    %c224_i32 = arith.constant 224 : i32
    %366 = tpu.dynamic_rotate %364 by %c224_i32 dim 1 : vector<8x256xf32>, i32 -> vector<8x256xf32>
    %c2_i32_125 = arith.constant 2 : i32
    %367 = tpu.dynamic_rotate %365 by %c2_i32_125 dim 1 : vector<8x256xf32>, i32 -> vector<8x256xf32>
    %368 = vector.broadcast %159 : vector<1x256xf32> to vector<8x256xf32>
    %369 = arith.mulf %367, %368 : vector<8x256xf32>
    %370 = vector.broadcast %176 : vector<1x256xf32> to vector<8x256xf32>
    %371 = arith.mulf %365, %370 : vector<8x256xf32>
    %c254_i32 = arith.constant 254 : i32
    %372 = tpu.dynamic_rotate %365 by %c254_i32 dim 1 : vector<8x256xf32>, i32 -> vector<8x256xf32>
    %373 = vector.broadcast %193 : vector<1x256xf32> to vector<8x256xf32>
    %374 = arith.mulf %372, %373 : vector<8x256xf32>
    %c2_i32_126 = arith.constant 2 : i32
    %375 = tpu.dynamic_rotate %364 by %c2_i32_126 dim 1 : vector<8x256xf32>, i32 -> vector<8x256xf32>
    %376 = vector.broadcast %210 : vector<1x256xf32> to vector<8x256xf32>
    %377 = arith.mulf %375, %376 : vector<8x256xf32>
    %c254_i32_127 = arith.constant 254 : i32
    %378 = tpu.dynamic_rotate %364 by %c254_i32_127 dim 1 : vector<8x256xf32>, i32 -> vector<8x256xf32>
    %379 = vector.broadcast %227 : vector<1x256xf32> to vector<8x256xf32>
    %380 = arith.mulf %378, %379 : vector<8x256xf32>
    %c2_i32_128 = arith.constant 2 : i32
    %381 = tpu.dynamic_rotate %366 by %c2_i32_128 dim 1 : vector<8x256xf32>, i32 -> vector<8x256xf32>
    %382 = vector.broadcast %244 : vector<1x256xf32> to vector<8x256xf32>
    %383 = arith.mulf %381, %382 : vector<8x256xf32>
    %384 = vector.broadcast %261 : vector<1x256xf32> to vector<8x256xf32>
    %385 = arith.mulf %366, %384 : vector<8x256xf32>
    %c254_i32_129 = arith.constant 254 : i32
    %386 = tpu.dynamic_rotate %366 by %c254_i32_129 dim 1 : vector<8x256xf32>, i32 -> vector<8x256xf32>
    %387 = vector.broadcast %278 : vector<1x256xf32> to vector<8x256xf32>
    %388 = arith.mulf %386, %387 : vector<8x256xf32>
    %389 = tpu.concatenate %369, %371, %374, %377, %364, %380, %383, %385, %388 in 0 : vector<8x256xf32>, vector<8x256xf32>, vector<8x256xf32>, vector<8x256xf32>, vector<8x256xf32>, vector<8x256xf32>, vector<8x256xf32>, vector<8x256xf32>, vector<8x256xf32> -> vector<72x256xf32>
    %390 = arith.truncf %389 : vector<72x256xf32> to vector<72x256xbf16>
    %c0_130 = arith.constant 0 : index
    %c0_131 = arith.constant 0 : index
    %391 = vector.load %arg6[%c0_130, %c0_131] : memref<16x72xbf16, #tpu.memory_space<vmem>>, vector<16x72xbf16>
    %cst_132 = arith.constant dense<0.000000e+00> : vector<16x256xf32>
    %392 = tpu.matmul %391, %390, %cst_132 {dimension_numbers = #tpu.dot_dimension_numbers<[1], [0], [0], [1], [0, 0, 1, 1], [], []>} : vector<16x72xbf16>, vector<72x256xbf16>, vector<16x256xf32> -> vector<16x256xf32>
    %c0_133 = arith.constant 0 : index
    %c0_134 = arith.constant 0 : index
    %393 = vector.load %arg7[%c0_133, %c0_134] : memref<16x1xf32, #tpu.memory_space<vmem>>, vector<16x1xf32>
    %394 = vector.broadcast %393 : vector<16x1xf32> to vector<16x256xf32>
    %395 = arith.addf %392, %394 : vector<16x256xf32>
    %cst_135 = arith.constant 0.000000e+00 : f32
    %396 = vector.broadcast %cst_135 : f32 to vector<16x256xf32>
    %397 = arith.maximumf %395, %396 : vector<16x256xf32>
    %c32_i32_136 = arith.constant 32 : i32
    %398 = tpu.dynamic_rotate %397 by %c32_i32_136 dim 1 : vector<16x256xf32>, i32 -> vector<16x256xf32>
    %c224_i32_137 = arith.constant 224 : i32
    %399 = tpu.dynamic_rotate %397 by %c224_i32_137 dim 1 : vector<16x256xf32>, i32 -> vector<16x256xf32>
    %c2_i32_138 = arith.constant 2 : i32
    %400 = tpu.dynamic_rotate %398 by %c2_i32_138 dim 1 : vector<16x256xf32>, i32 -> vector<16x256xf32>
    %401 = vector.broadcast %159 : vector<1x256xf32> to vector<16x256xf32>
    %402 = arith.mulf %400, %401 : vector<16x256xf32>
    %403 = vector.broadcast %176 : vector<1x256xf32> to vector<16x256xf32>
    %404 = arith.mulf %398, %403 : vector<16x256xf32>
    %c254_i32_139 = arith.constant 254 : i32
    %405 = tpu.dynamic_rotate %398 by %c254_i32_139 dim 1 : vector<16x256xf32>, i32 -> vector<16x256xf32>
    %406 = vector.broadcast %193 : vector<1x256xf32> to vector<16x256xf32>
    %407 = arith.mulf %405, %406 : vector<16x256xf32>
    %c2_i32_140 = arith.constant 2 : i32
    %408 = tpu.dynamic_rotate %397 by %c2_i32_140 dim 1 : vector<16x256xf32>, i32 -> vector<16x256xf32>
    %409 = vector.broadcast %210 : vector<1x256xf32> to vector<16x256xf32>
    %410 = arith.mulf %408, %409 : vector<16x256xf32>
    %c254_i32_141 = arith.constant 254 : i32
    %411 = tpu.dynamic_rotate %397 by %c254_i32_141 dim 1 : vector<16x256xf32>, i32 -> vector<16x256xf32>
    %412 = vector.broadcast %227 : vector<1x256xf32> to vector<16x256xf32>
    %413 = arith.mulf %411, %412 : vector<16x256xf32>
    %c2_i32_142 = arith.constant 2 : i32
    %414 = tpu.dynamic_rotate %399 by %c2_i32_142 dim 1 : vector<16x256xf32>, i32 -> vector<16x256xf32>
    %415 = vector.broadcast %244 : vector<1x256xf32> to vector<16x256xf32>
    %416 = arith.mulf %414, %415 : vector<16x256xf32>
    %417 = vector.broadcast %261 : vector<1x256xf32> to vector<16x256xf32>
    %418 = arith.mulf %399, %417 : vector<16x256xf32>
    %c254_i32_143 = arith.constant 254 : i32
    %419 = tpu.dynamic_rotate %399 by %c254_i32_143 dim 1 : vector<16x256xf32>, i32 -> vector<16x256xf32>
    %420 = vector.broadcast %278 : vector<1x256xf32> to vector<16x256xf32>
    %421 = arith.mulf %419, %420 : vector<16x256xf32>
    %422 = tpu.concatenate %402, %404, %407, %410, %397, %413, %416, %418, %421 in 0 : vector<16x256xf32>, vector<16x256xf32>, vector<16x256xf32>, vector<16x256xf32>, vector<16x256xf32>, vector<16x256xf32>, vector<16x256xf32>, vector<16x256xf32>, vector<16x256xf32> -> vector<144x256xf32>
    %423 = arith.truncf %422 : vector<144x256xf32> to vector<144x256xbf16>
    %c0_144 = arith.constant 0 : index
    %c0_145 = arith.constant 0 : index
    %424 = vector.load %arg8[%c0_144, %c0_145] : memref<16x144xbf16, #tpu.memory_space<vmem>>, vector<16x144xbf16>
    %cst_146 = arith.constant dense<0.000000e+00> : vector<16x256xf32>
    %425 = tpu.matmul %424, %423, %cst_146 {dimension_numbers = #tpu.dot_dimension_numbers<[1], [0], [0], [1], [0, 0, 1, 1], [], []>} : vector<16x144xbf16>, vector<144x256xbf16>, vector<16x256xf32> -> vector<16x256xf32>
    %c0_147 = arith.constant 0 : index
    %c0_148 = arith.constant 0 : index
    %426 = vector.load %arg9[%c0_147, %c0_148] : memref<16x1xf32, #tpu.memory_space<vmem>>, vector<16x1xf32>
    %427 = vector.broadcast %426 : vector<16x1xf32> to vector<16x256xf32>
    %428 = arith.addf %425, %427 : vector<16x256xf32>
    %cst_149 = arith.constant 0.000000e+00 : f32
    %429 = vector.broadcast %cst_149 : f32 to vector<16x256xf32>
    %430 = arith.maximumf %428, %429 : vector<16x256xf32>
    %c16_i32_150 = arith.constant 16 : i32
    %431 = tpu.dynamic_rotate %430 by %c16_i32_150 dim 1 : vector<16x256xf32>, i32 -> vector<16x256xf32>
    %c240_i32_151 = arith.constant 240 : i32
    %432 = tpu.dynamic_rotate %430 by %c240_i32_151 dim 1 : vector<16x256xf32>, i32 -> vector<16x256xf32>
    %c16_i32_152 = arith.constant 16 : i32
    %433 = tpu.dynamic_rotate %352 by %c16_i32_152 dim 1 : vector<8x256xf32>, i32 -> vector<8x256xf32>
    %c240_i32_153 = arith.constant 240 : i32
    %434 = tpu.dynamic_rotate %352 by %c240_i32_153 dim 1 : vector<8x256xf32>, i32 -> vector<8x256xf32>
    %c1_i32_154 = arith.constant 1 : i32
    %435 = tpu.dynamic_rotate %431 by %c1_i32_154 dim 1 : vector<16x256xf32>, i32 -> vector<16x256xf32>
    %436 = vector.broadcast %23 : vector<1x256xf32> to vector<16x256xf32>
    %437 = arith.mulf %435, %436 : vector<16x256xf32>
    %c1_i32_155 = arith.constant 1 : i32
    %438 = tpu.dynamic_rotate %433 by %c1_i32_155 dim 1 : vector<8x256xf32>, i32 -> vector<8x256xf32>
    %439 = vector.broadcast %23 : vector<1x256xf32> to vector<8x256xf32>
    %440 = arith.mulf %438, %439 : vector<8x256xf32>
    %441 = vector.broadcast %40 : vector<1x256xf32> to vector<16x256xf32>
    %442 = arith.mulf %431, %441 : vector<16x256xf32>
    %443 = vector.broadcast %40 : vector<1x256xf32> to vector<8x256xf32>
    %444 = arith.mulf %433, %443 : vector<8x256xf32>
    %c255_i32_156 = arith.constant 255 : i32
    %445 = tpu.dynamic_rotate %431 by %c255_i32_156 dim 1 : vector<16x256xf32>, i32 -> vector<16x256xf32>
    %446 = vector.broadcast %57 : vector<1x256xf32> to vector<16x256xf32>
    %447 = arith.mulf %445, %446 : vector<16x256xf32>
    %c255_i32_157 = arith.constant 255 : i32
    %448 = tpu.dynamic_rotate %433 by %c255_i32_157 dim 1 : vector<8x256xf32>, i32 -> vector<8x256xf32>
    %449 = vector.broadcast %57 : vector<1x256xf32> to vector<8x256xf32>
    %450 = arith.mulf %448, %449 : vector<8x256xf32>
    %c1_i32_158 = arith.constant 1 : i32
    %451 = tpu.dynamic_rotate %430 by %c1_i32_158 dim 1 : vector<16x256xf32>, i32 -> vector<16x256xf32>
    %452 = vector.broadcast %74 : vector<1x256xf32> to vector<16x256xf32>
    %453 = arith.mulf %451, %452 : vector<16x256xf32>
    %c1_i32_159 = arith.constant 1 : i32
    %454 = tpu.dynamic_rotate %352 by %c1_i32_159 dim 1 : vector<8x256xf32>, i32 -> vector<8x256xf32>
    %455 = vector.broadcast %74 : vector<1x256xf32> to vector<8x256xf32>
    %456 = arith.mulf %454, %455 : vector<8x256xf32>
    %c255_i32_160 = arith.constant 255 : i32
    %457 = tpu.dynamic_rotate %430 by %c255_i32_160 dim 1 : vector<16x256xf32>, i32 -> vector<16x256xf32>
    %458 = vector.broadcast %91 : vector<1x256xf32> to vector<16x256xf32>
    %459 = arith.mulf %457, %458 : vector<16x256xf32>
    %c255_i32_161 = arith.constant 255 : i32
    %460 = tpu.dynamic_rotate %352 by %c255_i32_161 dim 1 : vector<8x256xf32>, i32 -> vector<8x256xf32>
    %461 = vector.broadcast %91 : vector<1x256xf32> to vector<8x256xf32>
    %462 = arith.mulf %460, %461 : vector<8x256xf32>
    %c1_i32_162 = arith.constant 1 : i32
    %463 = tpu.dynamic_rotate %432 by %c1_i32_162 dim 1 : vector<16x256xf32>, i32 -> vector<16x256xf32>
    %464 = vector.broadcast %108 : vector<1x256xf32> to vector<16x256xf32>
    %465 = arith.mulf %463, %464 : vector<16x256xf32>
    %c1_i32_163 = arith.constant 1 : i32
    %466 = tpu.dynamic_rotate %434 by %c1_i32_163 dim 1 : vector<8x256xf32>, i32 -> vector<8x256xf32>
    %467 = vector.broadcast %108 : vector<1x256xf32> to vector<8x256xf32>
    %468 = arith.mulf %466, %467 : vector<8x256xf32>
    %469 = vector.broadcast %125 : vector<1x256xf32> to vector<16x256xf32>
    %470 = arith.mulf %432, %469 : vector<16x256xf32>
    %471 = vector.broadcast %125 : vector<1x256xf32> to vector<8x256xf32>
    %472 = arith.mulf %434, %471 : vector<8x256xf32>
    %c255_i32_164 = arith.constant 255 : i32
    %473 = tpu.dynamic_rotate %432 by %c255_i32_164 dim 1 : vector<16x256xf32>, i32 -> vector<16x256xf32>
    %474 = vector.broadcast %142 : vector<1x256xf32> to vector<16x256xf32>
    %475 = arith.mulf %473, %474 : vector<16x256xf32>
    %c255_i32_165 = arith.constant 255 : i32
    %476 = tpu.dynamic_rotate %434 by %c255_i32_165 dim 1 : vector<8x256xf32>, i32 -> vector<8x256xf32>
    %477 = vector.broadcast %142 : vector<1x256xf32> to vector<8x256xf32>
    %478 = arith.mulf %476, %477 : vector<8x256xf32>
    %479 = tpu.concatenate %437, %440, %442, %444, %447, %450, %453, %456, %430, %352, %459, %462, %465, %468, %470, %472 in 0 : vector<16x256xf32>, vector<8x256xf32>, vector<16x256xf32>, vector<8x256xf32>, vector<16x256xf32>, vector<8x256xf32>, vector<16x256xf32>, vector<8x256xf32>, vector<16x256xf32>, vector<8x256xf32>, vector<16x256xf32>, vector<8x256xf32>, vector<16x256xf32>, vector<8x256xf32>, vector<16x256xf32>, vector<8x256xf32> -> vector<192x256xf32>
    %480 = tpu.concatenate %475, %478 in 0 : vector<16x256xf32>, vector<8x256xf32> -> vector<24x256xf32>
    %481 = tpu.concatenate %479, %480 in 0 : vector<192x256xf32>, vector<24x256xf32> -> vector<216x256xf32>
    %482 = arith.truncf %481 : vector<216x256xf32> to vector<216x256xbf16>
    %c0_166 = arith.constant 0 : index
    %c0_167 = arith.constant 0 : index
    %483 = vector.load %arg10[%c0_166, %c0_167] : memref<8x216xbf16, #tpu.memory_space<vmem>>, vector<8x216xbf16>
    %cst_168 = arith.constant dense<0.000000e+00> : vector<8x256xf32>
    %484 = tpu.matmul %483, %482, %cst_168 {dimension_numbers = #tpu.dot_dimension_numbers<[1], [0], [0], [1], [0, 0, 1, 1], [], []>} : vector<8x216xbf16>, vector<216x256xbf16>, vector<8x256xf32> -> vector<8x256xf32>
    %c0_169 = arith.constant 0 : index
    %c0_170 = arith.constant 0 : index
    %485 = vector.load %arg11[%c0_169, %c0_170] : memref<8x1xf32, #tpu.memory_space<vmem>>, vector<8x1xf32>
    %486 = vector.broadcast %485 : vector<8x1xf32> to vector<8x256xf32>
    %487 = arith.addf %484, %486 : vector<8x256xf32>
    %cst_171 = arith.constant 0.000000e+00 : f32
    %488 = vector.broadcast %cst_171 : f32 to vector<8x256xf32>
    %489 = arith.maximumf %487, %488 : vector<8x256xf32>
    %c16_i32_172 = arith.constant 16 : i32
    %490 = tpu.dynamic_rotate %489 by %c16_i32_172 dim 1 : vector<8x256xf32>, i32 -> vector<8x256xf32>
    %c240_i32_173 = arith.constant 240 : i32
    %491 = tpu.dynamic_rotate %489 by %c240_i32_173 dim 1 : vector<8x256xf32>, i32 -> vector<8x256xf32>
    %c1_i32_174 = arith.constant 1 : i32
    %492 = tpu.dynamic_rotate %490 by %c1_i32_174 dim 1 : vector<8x256xf32>, i32 -> vector<8x256xf32>
    %493 = vector.broadcast %23 : vector<1x256xf32> to vector<8x256xf32>
    %494 = arith.mulf %492, %493 : vector<8x256xf32>
    %495 = vector.broadcast %40 : vector<1x256xf32> to vector<8x256xf32>
    %496 = arith.mulf %490, %495 : vector<8x256xf32>
    %c255_i32_175 = arith.constant 255 : i32
    %497 = tpu.dynamic_rotate %490 by %c255_i32_175 dim 1 : vector<8x256xf32>, i32 -> vector<8x256xf32>
    %498 = vector.broadcast %57 : vector<1x256xf32> to vector<8x256xf32>
    %499 = arith.mulf %497, %498 : vector<8x256xf32>
    %c1_i32_176 = arith.constant 1 : i32
    %500 = tpu.dynamic_rotate %489 by %c1_i32_176 dim 1 : vector<8x256xf32>, i32 -> vector<8x256xf32>
    %501 = vector.broadcast %74 : vector<1x256xf32> to vector<8x256xf32>
    %502 = arith.mulf %500, %501 : vector<8x256xf32>
    %c255_i32_177 = arith.constant 255 : i32
    %503 = tpu.dynamic_rotate %489 by %c255_i32_177 dim 1 : vector<8x256xf32>, i32 -> vector<8x256xf32>
    %504 = vector.broadcast %91 : vector<1x256xf32> to vector<8x256xf32>
    %505 = arith.mulf %503, %504 : vector<8x256xf32>
    %c1_i32_178 = arith.constant 1 : i32
    %506 = tpu.dynamic_rotate %491 by %c1_i32_178 dim 1 : vector<8x256xf32>, i32 -> vector<8x256xf32>
    %507 = vector.broadcast %108 : vector<1x256xf32> to vector<8x256xf32>
    %508 = arith.mulf %506, %507 : vector<8x256xf32>
    %509 = vector.broadcast %125 : vector<1x256xf32> to vector<8x256xf32>
    %510 = arith.mulf %491, %509 : vector<8x256xf32>
    %c255_i32_179 = arith.constant 255 : i32
    %511 = tpu.dynamic_rotate %491 by %c255_i32_179 dim 1 : vector<8x256xf32>, i32 -> vector<8x256xf32>
    %512 = vector.broadcast %142 : vector<1x256xf32> to vector<8x256xf32>
    %513 = arith.mulf %511, %512 : vector<8x256xf32>
    %514 = tpu.concatenate %494, %496, %499, %502, %489, %505, %508, %510, %513 in 0 : vector<8x256xf32>, vector<8x256xf32>, vector<8x256xf32>, vector<8x256xf32>, vector<8x256xf32>, vector<8x256xf32>, vector<8x256xf32>, vector<8x256xf32>, vector<8x256xf32> -> vector<72x256xf32>
    %515 = arith.truncf %514 : vector<72x256xf32> to vector<72x256xbf16>
    %c0_180 = arith.constant 0 : index
    %c0_181 = arith.constant 0 : index
    %516 = vector.load %arg12[%c0_180, %c0_181] : memref<8x72xbf16, #tpu.memory_space<vmem>>, vector<8x72xbf16>
    %cst_182 = arith.constant dense<0.000000e+00> : vector<8x256xf32>
    %517 = tpu.matmul %516, %515, %cst_182 {dimension_numbers = #tpu.dot_dimension_numbers<[1], [0], [0], [1], [0, 0, 1, 1], [], []>} : vector<8x72xbf16>, vector<72x256xbf16>, vector<8x256xf32> -> vector<8x256xf32>
    %c0_183 = arith.constant 0 : index
    %c0_184 = arith.constant 0 : index
    %518 = vector.load %arg13[%c0_183, %c0_184] : memref<8x1xf32, #tpu.memory_space<vmem>>, vector<8x1xf32>
    %519 = vector.broadcast %518 : vector<8x1xf32> to vector<8x256xf32>
    %520 = arith.addf %517, %519 : vector<8x256xf32>
    %cst_185 = arith.constant 0.000000e+00 : f32
    %521 = vector.broadcast %cst_185 : f32 to vector<8x256xf32>
    %522 = arith.maximumf %520, %521 : vector<8x256xf32>
    %c0_186 = arith.constant 0 : index
    %c0_187 = arith.constant 0 : index
    %523 = vector.load %arg14[%c0_186, %c0_187] : memref<4x8xbf16, #tpu.memory_space<vmem>>, vector<4x8xbf16>
    %524 = arith.truncf %522 : vector<8x256xf32> to vector<8x256xbf16>
    %cst_188 = arith.constant dense<0.000000e+00> : vector<4x256xf32>
    %525 = tpu.matmul %523, %524, %cst_188 {dimension_numbers = #tpu.dot_dimension_numbers<[1], [0], [0], [1], [0, 0, 1, 1], [], []>} : vector<4x8xbf16>, vector<8x256xbf16>, vector<4x256xf32> -> vector<4x256xf32>
    %c0_189 = arith.constant 0 : index
    %c0_190 = arith.constant 0 : index
    %526 = vector.load %arg15[%c0_189, %c0_190] : memref<4x1xf32, #tpu.memory_space<vmem>>, vector<4x1xf32>
    %527 = vector.broadcast %526 : vector<4x1xf32> to vector<4x256xf32>
    %528 = arith.addf %525, %527 : vector<4x256xf32>
    %529 = arith.addf %528, %1 : vector<4x256xf32>
    %530 = vector.extract_strided_slice %529 {offsets = [1, 0], sizes = [1, 256], strides = [1, 1]} : vector<4x256xf32> to vector<1x256xf32>
    %531 = vector.extract_strided_slice %529 {offsets = [2, 0], sizes = [1, 256], strides = [1, 1]} : vector<4x256xf32> to vector<1x256xf32>
    %532 = vector.extract_strided_slice %529 {offsets = [3, 0], sizes = [1, 256], strides = [1, 1]} : vector<4x256xf32> to vector<1x256xf32>
    %533 = arith.mulf %530, %530 : vector<1x256xf32>
    %534 = arith.mulf %531, %531 : vector<1x256xf32>
    %535 = arith.addf %533, %534 : vector<1x256xf32>
    %536 = arith.mulf %532, %532 : vector<1x256xf32>
    %537 = arith.addf %535, %536 : vector<1x256xf32>
    %cst_191 = arith.constant 1.000000e-24 : f32
    %538 = vector.broadcast %cst_191 : f32 to vector<1x256xf32>
    %539 = arith.maximumf %537, %538 : vector<1x256xf32>
    %540 = math.rsqrt %539 : vector<1x256xf32>
    %541 = vector.extract_strided_slice %529 {offsets = [0, 0], sizes = [1, 256], strides = [1, 1]} : vector<4x256xf32> to vector<1x256xf32>
    %c0_192 = arith.constant 0 : index
    %c0_193 = arith.constant 0 : index
    %c0_194 = arith.constant 0 : index
    %542 = vector.load %arg16[%c0_192, %c0_193, %c0_194] : memref<1x4x256xf32, #tpu.memory_space<vmem>>, vector<1x1x256xf32>
    %543 = vector.shape_cast %542 : vector<1x1x256xf32> to vector<1x256xf32>
    %544 = vector.shape_cast %541 : vector<1x256xf32> to vector<1x1x256xf32>
    tpu.vector_store %arg16[%c0_192, %c0_193, %c0_194], %544 {strides = array<i32>} : memref<1x4x256xf32, #tpu.memory_space<vmem>>, vector<1x1x256xf32>,
    %545 = vector.extract_strided_slice %529 {offsets = [1, 0], sizes = [3, 256], strides = [1, 1]} : vector<4x256xf32> to vector<3x256xf32>
    %546 = vector.broadcast %540 : vector<1x256xf32> to vector<3x256xf32>
    %547 = arith.mulf %545, %546 : vector<3x256xf32>
    %c0_195 = arith.constant 0 : index
    %c1 = arith.constant 1 : index
    %c0_196 = arith.constant 0 : index
    %548 = vector.load %arg16[%c0_195, %c1, %c0_196] : memref<1x4x256xf32, #tpu.memory_space<vmem>>, vector<1x3x256xf32>
    %549 = vector.shape_cast %548 : vector<1x3x256xf32> to vector<3x256xf32>
    %550 = vector.shape_cast %547 : vector<3x256xf32> to vector<1x3x256xf32>
    tpu.vector_store %arg16[%c0_195, %c1, %c0_196], %550 {strides = array<i32>} : memref<1x4x256xf32, #tpu.memory_space<vmem>>, vector<1x3x256xf32>,
    return
  }
  func.func @transform_0(%arg0: i32) -> (i32, i32, i32) {
    %c0_i32 = arith.constant 0 : i32
    %c0_i32_0 = arith.constant 0 : i32
    %c0_i32_1 = arith.constant 0 : i32
    return %arg0, %c0_i32, %c0_i32_0 : i32, i32, i32
  }
  func.func @transform_1(%arg0: i32) -> (i32, i32) {
    %c0_i32 = arith.constant 0 : i32
    %c0_i32_0 = arith.constant 0 : i32
    %c0_i32_1 = arith.constant 0 : i32
    return %c0_i32, %c0_i32_0 : i32, i32
  }
  func.func @transform_2(%arg0: i32) -> (i32, i32) {
    %c0_i32 = arith.constant 0 : i32
    %c0_i32_0 = arith.constant 0 : i32
    %c0_i32_1 = arith.constant 0 : i32
    return %c0_i32, %c0_i32_0 : i32, i32
  }
  func.func @transform_3(%arg0: i32) -> (i32, i32) {
    %c0_i32 = arith.constant 0 : i32
    %c0_i32_0 = arith.constant 0 : i32
    %c0_i32_1 = arith.constant 0 : i32
    return %c0_i32, %c0_i32_0 : i32, i32
  }
  func.func @transform_4(%arg0: i32) -> (i32, i32) {
    %c0_i32 = arith.constant 0 : i32
    %c0_i32_0 = arith.constant 0 : i32
    %c0_i32_1 = arith.constant 0 : i32
    return %c0_i32, %c0_i32_0 : i32, i32
  }
  func.func @transform_5(%arg0: i32) -> (i32, i32) {
    %c0_i32 = arith.constant 0 : i32
    %c0_i32_0 = arith.constant 0 : i32
    %c0_i32_1 = arith.constant 0 : i32
    return %c0_i32, %c0_i32_0 : i32, i32
  }
  func.func @transform_6(%arg0: i32) -> (i32, i32) {
    %c0_i32 = arith.constant 0 : i32
    %c0_i32_0 = arith.constant 0 : i32
    %c0_i32_1 = arith.constant 0 : i32
    return %c0_i32, %c0_i32_0 : i32, i32
  }
  func.func @transform_7(%arg0: i32) -> (i32, i32) {
    %c0_i32 = arith.constant 0 : i32
    %c0_i32_0 = arith.constant 0 : i32
    %c0_i32_1 = arith.constant 0 : i32
    return %c0_i32, %c0_i32_0 : i32, i32
  }
  func.func @transform_8(%arg0: i32) -> (i32, i32) {
    %c0_i32 = arith.constant 0 : i32
    %c0_i32_0 = arith.constant 0 : i32
    %c0_i32_1 = arith.constant 0 : i32
    return %c0_i32, %c0_i32_0 : i32, i32
  }
  func.func @transform_9(%arg0: i32) -> (i32, i32) {
    %c0_i32 = arith.constant 0 : i32
    %c0_i32_0 = arith.constant 0 : i32
    %c0_i32_1 = arith.constant 0 : i32
    return %c0_i32, %c0_i32_0 : i32, i32
  }
  func.func @transform_10(%arg0: i32) -> (i32, i32) {
    %c0_i32 = arith.constant 0 : i32
    %c0_i32_0 = arith.constant 0 : i32
    %c0_i32_1 = arith.constant 0 : i32
    return %c0_i32, %c0_i32_0 : i32, i32
  }
  func.func @transform_11(%arg0: i32) -> (i32, i32) {
    %c0_i32 = arith.constant 0 : i32
    %c0_i32_0 = arith.constant 0 : i32
    %c0_i32_1 = arith.constant 0 : i32
    return %c0_i32, %c0_i32_0 : i32, i32
  }
  func.func @transform_12(%arg0: i32) -> (i32, i32) {
    %c0_i32 = arith.constant 0 : i32
    %c0_i32_0 = arith.constant 0 : i32
    %c0_i32_1 = arith.constant 0 : i32
    return %c0_i32, %c0_i32_0 : i32, i32
  }
  func.func @transform_13(%arg0: i32) -> (i32, i32) {
    %c0_i32 = arith.constant 0 : i32
    %c0_i32_0 = arith.constant 0 : i32
    %c0_i32_1 = arith.constant 0 : i32
    return %c0_i32, %c0_i32_0 : i32, i32
  }
  func.func @transform_14(%arg0: i32) -> (i32, i32) {
    %c0_i32 = arith.constant 0 : i32
    %c0_i32_0 = arith.constant 0 : i32
    %c0_i32_1 = arith.constant 0 : i32
    return %c0_i32, %c0_i32_0 : i32, i32
  }
  func.func @transform_15(%arg0: i32) -> (i32, i32, i32) {
    %c0_i32 = arith.constant 0 : i32
    %c0_i32_0 = arith.constant 0 : i32
    %c0_i32_1 = arith.constant 0 : i32
    return %arg0, %c0_i32, %c0_i32_0 : i32, i32, i32
  }
}

</mosaic_0001>

<bundles_post_ra>
// kernel: cons_module_forward.1
= control target key start
LH: loop header
LB: loop body
LE: loop exit
PB: predicated region body
PF: predicated region fallthrough
CT: control target
= control target key end

     0   :  { %s2201_s18 = smov 0   ;;  %s3547_s0 = inlined_call_operand.vmem [shape: f32[2,4,256], index: 0, kind: input, shape index: {}]   ;;  %s3548_s1 = inlined_call_operand.vmem [shape: bf16[8,36], index: 1, kind: input, shape index: {}]   ;;  %s3549_s2 = inlined_call_operand.vmem [shape: f32[8,1], index: 2, kind: input, shape index: {}]   ;;  %s3550_s3 = inlined_call_operand.vmem [shape: bf16[8,72], index: 3, kind: input, shape index: {}]   ;;  %s3551_s4 = inlined_call_operand.vmem [shape: f32[8,1], index: 4, kind: input, shape index: {}]   ;;  %s3552_s5 = inlined_call_operand.vmem [shape: bf16[16,72], index: 5, kind: input, shape index: {}]   ;;  %s3553_s6 = inlined_call_operand.vmem [shape: f32[16,1], index: 6, kind: input, shape index: {}]   ;;  %s3554_s7 = inlined_call_operand.vmem [shape: bf16[16,144], index: 7, kind: input, shape index: {}]   ;;  %s3555_s8 = inlined_call_operand.vmem [shape: f32[16,1], index: 8, kind: input, shape index: {}]   ;;  %s3556_s9 = inlined_call_operand.vmem [shape: bf16[8,216], index: 9, kind: input, shape index: {}]   ;;  %s3557_s10 = inlined_call_operand.vmem [shape: f32[8,1], index: 10, kind: input, shape index: {}]   ;;  %s3558_s11 = inlined_call_operand.vmem [shape: bf16[8,72], index: 11, kind: input, shape index: {}]   ;;  %s3559_s12 = inlined_call_operand.vmem [shape: f32[8,1], index: 12, kind: input, shape index: {}]   ;;  %s3560_s13 = inlined_call_operand.vmem [shape: bf16[4,8], index: 13, kind: input, shape index: {}]   ;;  %s3561_s14 = inlined_call_operand.vmem [shape: f32[4,1], index: 14, kind: input, shape index: {}]   ;;  %s3562_s15 = inlined_call_operand.vmem [shape: f32[2,4,256], index: 15, kind: output, shape index: {}]  }
   0x1 LB: > { %s2006_s19 = sadd.s32 4294967295, %s2108_s18   ;;  %p2010_p0 = scmp.ge.s32.totalorder %s2108_s18, 1  ;;  %s2108_s18 = sphi %s2201_s18, %s25_s18  }
   0x2   : > { %p437_p1 = scmp.lt.s32.totalorder %s2108_s18, 3 }
   0x4   : > { %p438_p2 = pnand %p2010_p0, %p437_p1 }
   0x6   : > { %441 = sbr.rel (%p438_p2) target bundleno = 3436 (0xd6c), region = 80 }
   0xd   : > { %p485_p3 = scmp.lt.s32.totalorder %s2006_s19, 1  ;;  %s2110_s24 = smov 16   ;;  %v3576_v2 = vlaneseq  ;;  %v3578_v12 = vmov 0   ;;  %v817_v13 = vld [vmem:[%s3549_s2] sm:$0xff]  ;;  %v2115_v40 = vmov 0.0  }
   0xe   : > { %s2111_s25 = smov 112   ;;  %s2112_s26 = smov 1   ;;  %866 = vmatprep.mubr.bf16.mxu0 %v3578_v12  ;;  %2088 = vset.pattern.permute.xlu0 %v3578_v12 }
   0xf   : > { %s3728_s19 = smov (!%p485_p3, %s2006_s19), 1  ;;  %s2113_s27 = smov 127   ;;  %v2243_v4 = vand.u32 127, %v3576_v2  ;;  %1000 = vmatprep.mubr.bf16.mxu1 %v3578_v12  ;;  %2089 = vset.pattern.permute.xlu1 %v3578_v12 }
  0x10   : > { %s3567_s20 = sshll.u32 %s3728_s19, 3  ;;  %s2116_s29 = smov 32  }
  0x11   : > { %s2217_s23 = scalar_lea.vmem %s3547_s0, %s3567_s20  ;;  %vm3564_vm0 = vcmp.lt.s32.totalorder %v2243_v4, 16  ;;  %vm3563_vm1 = vcmp.lt.s32.totalorder %v2243_v4, 112  ;;  %v499_v14 = vadd.s32 128, %v2243_v4  ;;  %v2288_v15 = vshra.s32 %v2243_v4, 4  ;;  %s2117_s30 = smov 96  }
  0x12   : > { %v2220_v0 = vld [vmem:[%s2217_s23] sm:$0xff]  ;;  %v2296_v20 = vand.u32 15, %v2243_v4  ;;  %s2118_s16 = smov 2   ;;  %s2119_s17 = smov 126  }
  0x13   : > { %709 = vrot.lane.b32.xlu0 %v2220_v0, %s2110_s24  ;;  %716 = vrot.lane.b32.xlu1 %v2220_v0, %s2111_s25  ;;  %v2228_v1 = vcombine.high %v2220_v0, %v2220_v0  ;;  %v2290_v16 = vshra.s32 %v499_v14, 4  ;;  %v504_v17 = vadd.s32 4294967295, %v2288_v15  ;;  %v574_v18 = vadd.s32 1, %v2288_v15 }
  0x14   : > { %v2298_v21 = vand.u32 15, %v499_v14  ;;  %v506_v23 = vadd.s32 4294967295, %v2296_v20  ;;  %vm552_vm9 = vcmp.ge.s32.totalorder %v2288_v15, 0  ;;  %vm554_vm10 = vcmp.lt.s32.totalorder %v2288_v15, 16 }
  0x15   : > { %3587 = vst [vmem:[#allocation2_spill] sm:$0xff] %v2228_v1  ;;  %v505_v19 = vadd.s32 4294967295, %v2290_v16  ;;  %vm508_vm2 = vcmp.ge.s32.totalorder %v504_v17, 0  ;;  %vm510_vm3 = vcmp.lt.s32.totalorder %v504_v17, 16  ;;  %vm576_vm4 = vcmp.ge.s32.totalorder %v574_v18, 0 }
  0x16   : > { %vm578_vm5 = vcmp.lt.s32.totalorder %v574_v18, 16  ;;  %v575_v22 = vadd.s32 1, %v2290_v16  ;;  %vm2302_vm8 = vmand %vm508_vm2, %vm510_vm3  ;;  %v2307_v25 = vadd.s32 4294967295, %v2298_v21  ;;  %vm553_vm12 = vcmp.ge.s32.totalorder %v2290_v16, 0 }
  0x17   : > { %711 = vrot.lane.b32.xlu0 %v2228_v1, %s2110_s24  ;;  %718 = vrot.lane.b32.xlu1 %v2228_v1, %s2111_s25  ;;  %vm509_vm6 = vcmp.ge.s32.totalorder %v505_v19, 0  ;;  %vm511_vm7 = vcmp.lt.s32.totalorder %v505_v19, 16  ;;  %vm2311_vm11 = vmand %vm576_vm4, %vm578_vm5  ;;  %vm555_vm13 = vcmp.lt.s32.totalorder %v2290_v16, 16  ;;  %v2318_v27 = vadd.s32 1, %v2296_v20 }
  0x18   : > { %vm2320_vm14 = vmand %vm509_vm6, %vm511_vm7  ;;  %vm577_vm15 = vcmp.ge.s32.totalorder %v575_v22, 0  ;;  %vm579_vm2 = vcmp.lt.s32.totalorder %v575_v22, 16  ;;  %v2325_v31 = vadd.s32 1, %v2298_v21  ;;  %vm3566_vm3 = vcmp.ge.s32.totalorder %v506_v23, 0 }
  0x19   : > { %vm2327_vm4 = vmand %vm552_vm9, %vm554_vm10  ;;  %vm515_vm5 = vcmp.ge.s32.totalorder %v2307_v25, 0  ;;  %vm3565_vm7 = vcmp.lt.s32.totalorder %v2318_v27, 16  ;;  %v2376_v41 = vsel %vm2302_vm8, 1.0, %v2115_v40  ;;  %v2382_v42 = vsel %vm2311_vm11, 1.0, %v2115_v40 }
  0x1a   : > { %vm2336_vm6 = vmand %vm577_vm15, %vm579_vm2  ;;  %vm545_vm9 = vcmp.lt.s32.totalorder %v2325_v31, 16  ;;  %vm3569_vm15 = vcmp.lt.s32.totalorder %v2243_v4, 1  ;;  %v2391_v43 = vsel %vm2320_vm14, 1.0, %v2115_v40 }
  0x1b   : > { %745 = vrot.lane.b32.xlu1 %v2228_v1, %s2112_s26  ;;  %743 = vrot.lane.b32.xlu0 %v2220_v0, %s2112_s26  ;;  %vm2369_vm2 = vmand %vm2302_vm8, %vm3566_vm3  ;;  %v2396_v44 = vsel %vm2336_vm6, 1.0, %v2115_v40 }
  0x1c   : > { %v2433_v55 = vsel %vm2369_vm2, 1.0, %v2115_v40 }
  0x1f   : > { %753 = vrot.lane.b32.xlu1 %v2228_v1, %s2113_s27  ;;  %751 = vrot.lane.b32.xlu0 %v2220_v0, %s2113_s27 }
  0x85   : > { %v710_v3 = vpop.permute.xlu0 %709  ;;  %v717_v5 = vpop.permute.xlu1 %716 }
  0x89   : > { %v712_v6 = vpop.permute.xlu0 %711  ;;  %v719_v9 = vpop.permute.xlu1 %718 }
  0x8a   : > { %v2248_v7 = vsel %vm3564_vm0, %v712_v6, %v710_v3  ;;  %v2252_v8 = vsel %vm3564_vm0, %v710_v3, %v712_v6  ;;  %v2265_v10 = vsel %vm3563_vm1, %v717_v5, %v719_v9  ;;  %v2269_v11 = vsel %vm3563_vm1, %v719_v9, %v717_v5  ;;  %vm2332_vm1 = vmand %vm553_vm12, %vm555_vm13 }
  0x8b   : > { %723 = vrot.lane.b32.xlu0 %v2248_v7, %s2112_s26  ;;  %725 = vrot.lane.b32.xlu1 %v2252_v8, %s2112_s26  ;;  %vm2344_vm0 = vmand %vm2327_vm4, %vm3566_vm3  ;;  %v732_v58 = vmul.f32 %v2376_v41, %v2248_v7  ;;  %v733_v59 = vmul.f32 %v2391_v43, %v2252_v8  ;;  %v767_v9 = vmul.f32 %v2382_v42, %v2265_v10 }
  0x8c   : > { %vm559_vm10 = vmand %vm2332_vm1, %vm515_vm5  ;;  %v2401_v45 = vsel %vm2344_vm0, 1.0, %v2115_v40  ;;  %vm3606_vm0 = vcmp.lt.s32.totalorder %v2318_v27, 16 }
  0x8d   : > { %v746_v29 = vpop.permute.xlu1 %745  ;;  %v744_v30 = vpop.permute.xlu0 %743  ;;  %vm2357_vm12 = vmand %vm2327_vm4, %vm3565_vm7  ;;  %vm3568_vm7 = vcmp.lt.s32.totalorder %v2243_v4, 127  ;;  %v2404_v46 = vsel %vm559_vm10, 1.0, %v2115_v40  ;;  %v779_v22 = vrot.slane %v732_v58, 4  ;;  %v797_v58 = vrot.slane %v767_v9, 4 }
  0x8e   : > { %vm569_vm13 = vmand %vm2332_vm1, %vm545_vm9  ;;  %v747_v47 = vsel %vm3569_vm15, %v744_v30, %v746_v29  ;;  %v748_v48 = vsel %vm3569_vm15, %v746_v29, %v744_v30  ;;  %v2413_v49 = vsel %vm2357_vm12, 1.0, %v2115_v40 }
  0x8f   : > { %734 = vrot.lane.b32.xlu0 %v2248_v7, %s2113_s27  ;;  %736 = vrot.lane.b32.xlu1 %v2252_v8, %s2113_s27  ;;  %vm517_vm3 = vmand %vm2320_vm14, %vm515_vm5  ;;  %v2416_v50 = vsel %vm569_vm13, 1.0, %v2115_v40  ;;  %v749_v62 = vmul.f32 %v2401_v45, %v748_v48  ;;  %v750_v63 = vmul.f32 %v2404_v46, %v747_v47 }
  0x90   : > { %vm2422_vm10 = vmand %vm2302_vm8, %vm3606_vm0  ;;  %v2436_v56 = vsel %vm517_vm3, 1.0, %v2115_v40  ;;  %vm3573_vm3 = vcmask 1043456  }
  0x91   : > { %v754_v36 = vpop.permute.xlu1 %753  ;;  %v752_v38 = vpop.permute.xlu0 %751  ;;  %vm547_vm8 = vmand %vm2320_vm14, %vm545_vm9  ;;  %v2457_v6 = vsel %vm2422_vm10, 1.0, %v2115_v40  ;;  %vm3609_vm14 = vcmp.ge.s32.totalorder %v506_v23, 0  ;;  %v780_v23 = vrot.slane %v733_v59, 4  ;;  %v786_v28 = vrot.slane %v750_v63, 4 }
  0x92   : > { %v755_v52 = vsel %vm3568_vm7, %v752_v38, %v754_v36  ;;  %v756_v53 = vsel %vm3568_vm7, %v754_v36, %v752_v38  ;;  %v2460_v7 = vsel %vm547_vm8, 1.0, %v2115_v40  ;;  %vm2465_vm12 = vmand %vm2311_vm11, %vm3609_vm14  ;;  %vm3620_vm8 = vcmp.lt.s32.totalorder %v2243_v4, 112 }
  0x93   : > { %759 = vrot.lane.b32.xlu0 %v2265_v10, %s2112_s26  ;;  %761 = vrot.lane.b32.xlu1 %v2269_v11, %s2112_s26  ;;  %v757_v3 = vmul.f32 %v2413_v49, %v755_v52  ;;  %v758_v5 = vmul.f32 %v2416_v50, %v756_v53  ;;  %vm583_vm13 = vmand %vm2336_vm6, %vm515_vm5  ;;  %v2488_v25 = vsel %vm2465_vm12, 1.0, %v2115_v40  ;;  %vm3572_vm12 = vcmask 588800  }
  0x94   : > { %v2491_v37 = vsel %vm583_vm13, 1.0, %v2115_v40  ;;  %vm2497_vm5 = vmand %vm2336_vm6, %vm545_vm9  ;;  %vm823_vm6 = vcmask 293888   ;;  %vm3618_vm9 = vcmp.lt.s32.totalorder %v2243_v4, 16 }
  0x95   : > { %v791_v35 = vrot.slane %v757_v3, 4  ;;  %v792_v36 = vrot.slane %v758_v5, 4  ;;  %3612 = vst [vmem:[#allocation3_spill] sm:$0xff] %v2491_v37  ;;  %vm3615_vm2 = vmmov %vm3606_vm0  ;;  %v2518_v26 = vsel %vm2497_vm5, 1.0, %v2115_v40 }
  0x96   : > { %vm600_vm0 = vmand %vm2311_vm11, %vm3615_vm2  ;;  %3616 = vst [vmem:[#allocation4_spill] sm:$0xff] %v2518_v26  ;;  %vm827_vm11 = vcmask 1041408  }
  0x97   : > { %769 = vrot.lane.b32.xlu0 %v2265_v10, %s2113_s27  ;;  %771 = vrot.lane.b32.xlu1 %v2269_v11, %s2113_s27  ;;  %v2521_v27 = vsel %vm600_vm0, 1.0, %v2115_v40  ;;  %v807_v3 = vsel %vm3573_vm3, %v2228_v1, %v792_v36  ;;  %v806_v8 = vsel %vm3573_vm3, %v2220_v0, %v791_v35  ;;  %vm3619_vm10 = vmmov %vm3618_vm9 }
  0x98   : > { %3617 = vst [vmem:[#allocation5_spill] sm:$0xff] %v2521_v27  ;;  %vm3621_vm14 = vmmov %vm3620_vm8 }
  0x9b   : > { %820 = vperm.xlu0 %2088, %v817_v13   ;;  %v768_v13 = vmul.f32 %v2396_v44, %v2269_v11  ;;  %v785_v11 = vrot.slane %v749_v62, 4 }
  0x9d   : > { %v798_v59 = vrot.slane %v768_v13, 4 }
  0xfd   : > { %v726_v54 = vpop.permute.xlu1 %725  ;;  %v724_v57 = vpop.permute.xlu0 %723 }
  0xfe   : > { %v728_v60 = vsel %vm3569_vm15, %v724_v57, %v726_v54  ;;  %v729_v61 = vsel %vm3569_vm15, %v726_v54, %v724_v57 }
  0xff   : > { %v730_v14 = vmul.f32 %v2433_v55, %v729_v61  ;;  %v731_v17 = vmul.f32 %v2436_v56, %v728_v60 }
 0x101   : > { %v737_v18 = vpop.permute.xlu1 %736  ;;  %v735_v19 = vpop.permute.xlu0 %734  ;;  %v803_v48 = vsel %vm3573_vm3, %v731_v17, %v780_v23  ;;  %v802_v52 = vsel %vm3573_vm3, %v730_v14, %v779_v22 }
 0x102   : > { %v739_v24 = vsel %vm3568_vm7, %v735_v19, %v737_v18  ;;  %v740_v10 = vsel %vm3568_vm7, %v737_v18, %v735_v19 }
 0x103   : > { %v741_v29 = vmul.f32 %v2457_v6, %v739_v24  ;;  %v742_v30 = vmul.f32 %v2460_v7, %v740_v10  ;;  %v816_v10 = vld [vmem:[%s3548_s1] sm:$0xf] }
 0x105   : > { %v762_v39 = vpop.permute.xlu1 %761  ;;  %v760_v47 = vpop.permute.xlu0 %759  ;;  %v805_v51 = vsel %vm3573_vm3, %v742_v30, %v786_v28  ;;  %v804_v53 = vsel %vm3573_vm3, %v741_v29, %v785_v11 }
 0x106   : > { %v763_v31 = vsel %vm3569_vm15, %v760_v47, %v762_v39  ;;  %v764_v34 = vsel %vm3569_vm15, %v762_v39, %v760_v47  ;;  %v811_v54 = vpack.c.bf16 %v805_v51, %v803_v48  ;;  %v810_v57 = vpack.c.bf16 %v804_v53, %v802_v52 }
 0x107   : > { %v765_v60 = vmul.f32 %v2488_v25, %v764_v34  ;;  %v766_v61 = vmul.f32 %v2491_v37, %v763_v31 }
 0x108   : > { %834 = vmatprep.subr.bf16.mxu0 %v811_v54 }
 0x109   : > { %v772_v62 = vpop.permute.xlu1 %771  ;;  %835 = vmatpush1.bf16.msra.mxu0 %v810_v57  ;;  %v770_v63 = vpop.permute.xlu0 %769  ;;  %v809_v5 = vsel %vm3573_vm3, %v766_v61, %v798_v59  ;;  %v808_v9 = vsel %vm3573_vm3, %v765_v60, %v797_v58  ;;  %v952_v58 = vld [vmem:[%s3551_s4] sm:$0xff] }
 0x10a   : > { %v773_v13 = vsel %vm3568_vm7, %v770_v63, %v772_v62  ;;  %v774_v14 = vsel %vm3568_vm7, %v772_v62, %v770_v63  ;;  %v813_v17 = vpack.c.bf16 %v809_v5, %v807_v3  ;;  %v812_v18 = vpack.c.bf16 %v808_v9, %v806_v8 }
 0x10b   : > { %v776_v19 = vmul.f32 %v2518_v26, %v774_v14  ;;  %v775_v22 = vmul.f32 %v2521_v27, %v773_v13 }
 0x10c   : > { %836 = vmatprep.subr.bf16.mxu0 %v813_v17 }
 0x10d   : > { %v815_v23 = vpack.c.bf16 %v776_v19, %v776_v19  ;;  %837 = vmatpush1.bf16.msra.mxu0 %v812_v18  ;;  %v814_v24 = vpack.c.bf16 %v775_v22, %v775_v22 }
 0x10f   : > { %2047 = vmatprep.subr.msk.bf16.mxu0 %vm827_vm11, %v815_v23  ;;  %v829_v0 = vsel %vm827_vm11, %v814_v24, 0  ;;  %vm3622_vm11 = vmmov %vm3620_vm8 }
 0x111   : > { %839 = vmatpush1.bf16.msra.mxu0 %v829_v0 }
 0x114   : > { %2048 = vmatmul.mubr.msk.bf16.vlgmr.msra.gmra.mrb[0].mxu0 %vm823_vm6, %v816_v10  ;;  %vm3623_vm6 = vmmov %vm3620_vm8 }
 0x115   : > { %1189 = vmatprep.mubr.bf16.mxu0 %v3578_v12 }
 0x11a   : > { %v821_v11 = vpop.permute.xlu0 %820 }
 0x1e7   : > { %v868_v28 = vpop.f32.mrb[0].mxu0 }
 0x1e8   : > { %v869_v29 = vadd.f32 %v868_v28, %v821_v11  ;;  %v870_v30 = vpop.f32.mrb[1].mxu0 }
 0x1e9   : > { %v872_v35 = vpop.f32.mrb[2].mxu0  ;;  %v871_v38 = vadd.f32 %v870_v30, %v821_v11 }
 0x1ea   : > { %v2539_v36 = vmax.f32 %v869_v29, 0.0  ;;  %v873_v39 = vpop.f32.mrb[3].mxu0 }
 0x1eb   : > { %v2545_v47 = vmax.f32 %v871_v38, 0.0 }
 0x1ec   : > { %883 = vrot.lane.b32.xlu0 %v2539_v36, %s2111_s25  ;;  %877 = vrot.lane.b32.xlu1 %v2539_v36, %s2110_s24 }
 0x1f0   : > { %907 = vrot.lane.b32.xlu0 %v2539_v36, %s2112_s26  ;;  %879 = vrot.lane.b32.xlu1 %v2545_v47, %s2110_s24 }
 0x1f4   : > { %885 = vrot.lane.b32.xlu1 %v2545_v47, %s2111_s25 }
 0x1f8   : > { %909 = vrot.lane.b32.xlu1 %v2545_v47, %s2112_s26 }
 0x25e   : > { %v878_v48 = vpop.permute.xlu1 %877  ;;  %v884_v34 = vpop.permute.xlu0 %883 }
 0x262   : > { %v880_v51 = vpop.permute.xlu1 %879  ;;  %v908_v59 = vpop.permute.xlu0 %907 }
 0x263   : > { %v882_v52 = vsel %vm3618_vm9, %v880_v51, %v878_v48  ;;  %v881_v53 = vsel %vm3619_vm10, %v878_v48, %v880_v51  ;;  %vm3624_vm10 = vmmov %vm3618_vm9 }
 0x264   : > { %889 = vrot.lane.b32.xlu0 %v882_v52, %s2112_s26  ;;  %891 = vrot.lane.b32.xlu1 %v881_v53, %s2112_s26  ;;  %v898_v8 = vmul.f32 %v2391_v43, %v881_v53  ;;  %v897_v13 = vmul.f32 %v2376_v41, %v882_v52 }
 0x266   : > { %v886_v31 = vpop.permute.xlu1 %885 }
 0x267   : > { %v888_v54 = vsel %vm3620_vm8, %v886_v31, %v884_v34  ;;  %v887_v57 = vsel %vm3621_vm14, %v884_v34, %v886_v31  ;;  %vm3571_vm8 = vcmp.lt.s32.totalorder %v2243_v4, 32  ;;  %vm3570_vm14 = vcmp.lt.s32.totalorder %v2243_v4, 96 }
 0x268   : > { %899 = vrot.lane.b32.xlu0 %v882_v52, %s2113_s27  ;;  %901 = vrot.lane.b32.xlu1 %v881_v53, %s2113_s27 }
 0x26a   : > { %v910_v60 = vpop.permute.xlu1 %909 }
 0x26b   : > { %v911_v14 = vsel %vm3569_vm15, %v908_v59, %v910_v60  ;;  %v912_v17 = vsel %vm3569_vm15, %v910_v60, %v908_v59 }
 0x26c   : > { %915 = vrot.lane.b32.xlu0 %v2539_v36, %s2113_s27  ;;  %917 = vrot.lane.b32.xlu1 %v2545_v47, %s2113_s27  ;;  %v913_v10 = vmul.f32 %v2401_v45, %v912_v17  ;;  %v914_v11 = vmul.f32 %v2404_v46, %v911_v14 }
 0x270   : > { %925 = vrot.lane.b32.xlu1 %v888_v54, %s2112_s26  ;;  %923 = vrot.lane.b32.xlu0 %v887_v57, %s2112_s26 }
 0x274   : > { %935 = vrot.lane.b32.xlu1 %v888_v54, %s2113_s27  ;;  %933 = vrot.lane.b32.xlu0 %v887_v57, %s2113_s27 }
 0x278   : > { %955 = vperm.xlu0 %2088, %v952_v58  }
 0x2d6   : > { %v890_v61 = vpop.permute.xlu0 %889  ;;  %v892_v62 = vpop.permute.xlu1 %891 }
 0x2d7   : > { %v894_v63 = vsel %vm3569_vm15, %v892_v62, %v890_v61  ;;  %v893_v3 = vsel %vm3569_vm15, %v890_v61, %v892_v62  ;;  %v932_v62 = vmul.f32 %v2396_v44, %v888_v54 }
 0x2d8   : > { %v896_v5 = vmul.f32 %v2436_v56, %v893_v3  ;;  %v895_v9 = vmul.f32 %v2433_v55, %v894_v63  ;;  %v931_v63 = vmul.f32 %v2382_v42, %v887_v57 }
 0x2da   : > { %v900_v18 = vpop.permute.xlu0 %899  ;;  %v902_v19 = vpop.permute.xlu1 %901  ;;  %v942_v22 = vpack.c.bf16 %v898_v8, %v896_v5  ;;  %v941_v23 = vpack.c.bf16 %v897_v13, %v895_v9 }
 0x2db   : > { %v903_v24 = vsel %vm3568_vm7, %v900_v18, %v902_v19  ;;  %v904_v0 = vsel %vm3568_vm7, %v902_v19, %v900_v18 }
 0x2dc   : > { %v905_v28 = vmul.f32 %v2457_v6, %v903_v24  ;;  %v906_v29 = vmul.f32 %v2460_v7, %v904_v0  ;;  %968 = vmatprep.subr.bf16.mxu1 %v942_v22  ;;  %v951_v22 = vld [vmem:[%s3550_s3] sm:$0xf] }
 0x2dd   : > { %969 = vmatpush1.bf16.msra.mxu1 %v941_v23 }
 0x2de   : > { %v916_v30 = vpop.permute.xlu0 %915  ;;  %v918_v35 = vpop.permute.xlu1 %917  ;;  %v944_v38 = vpack.c.bf16 %v914_v11, %v906_v29  ;;  %v943_v39 = vpack.c.bf16 %v913_v10, %v905_v28 }
 0x2df   : > { %v919_v48 = vsel %vm3568_vm7, %v916_v30, %v918_v35  ;;  %v920_v51 = vsel %vm3568_vm7, %v918_v35, %v916_v30 }
 0x2e0   : > { %v921_v52 = vmul.f32 %v2413_v49, %v919_v48  ;;  %v922_v53 = vmul.f32 %v2416_v50, %v920_v51  ;;  %970 = vmatprep.subr.bf16.mxu1 %v944_v38  ;;  %v699_v48 = vand.u32 1, %v2298_v21 }
 0x2e1   : > { %971 = vmatpush1.bf16.msra.mxu1 %v943_v39  ;;  %v698_v39 = vand.u32 1, %v2296_v20 }
 0x2e2   : > { %v924_v31 = vpop.permute.xlu0 %923  ;;  %v926_v34 = vpop.permute.xlu1 %925  ;;  %v946_v58 = vpack.c.bf16 %v922_v53, %v2545_v47  ;;  %v945_v59 = vpack.c.bf16 %v921_v52, %v2539_v36  ;;  %vm701_vm5 = vcmp.eq.s32.totalorder %v699_v48, 0  ;;  %v1131_v48 = vld [vmem:[%s3553_s6] sm:$0xff] }
 0x2e3   : > { %v927_v60 = vsel %vm3569_vm15, %v924_v31, %v926_v34  ;;  %v928_v61 = vsel %vm3569_vm15, %v926_v34, %v924_v31  ;;  %vm700_vm13 = vcmp.eq.s32.totalorder %v698_v39, 0  ;;  %v1132_v39 = vld [vmem:[%s3553_s6 + $0x8] sm:$0xff] }
 0x2e4   : > { %v929_v3 = vmul.f32 %v2488_v25, %v928_v61  ;;  %v930_v5 = vmul.f32 %v2491_v37, %v927_v60  ;;  %972 = vmatprep.subr.bf16.mxu1 %v946_v58 }
 0x2e5   : > { %973 = vmatpush1.bf16.msra.mxu1 %v945_v59 }
 0x2e6   : > { %v934_v8 = vpop.permute.xlu0 %933  ;;  %v936_v47 = vpop.permute.xlu1 %935  ;;  %v948_v9 = vpack.c.bf16 %v932_v62, %v930_v5  ;;  %v947_v36 = vpack.c.bf16 %v931_v63, %v929_v3  ;;  %v702_v3 = vand.u32 1, %v2288_v15  ;;  %v703_v5 = vand.u32 1, %v2290_v16 }
 0x2e7   : > { %v937_v13 = vsel %vm3568_vm7, %v934_v8, %v936_v47  ;;  %v938_v14 = vsel %vm3568_vm7, %v936_v47, %v934_v8 }
 0x2e8   : > { %v940_v54 = vmul.f32 %v2518_v26, %v938_v14  ;;  %974 = vmatprep.subr.bf16.mxu1 %v948_v9  ;;  %v939_v57 = vmul.f32 %v2521_v27, %v937_v13  ;;  %vm704_vm2 = vcmp.eq.s32.totalorder %v702_v3, 0  ;;  %vm705_vm0 = vcmp.eq.s32.totalorder %v703_v5, 0 }
 0x2e9   : > { %975 = vmatpush1.bf16.msra.mxu1 %v947_v36  ;;  %v667_v5 = vadd.s32 2, %v2290_v16 }
 0x2ea   : > { %v950_v17 = vpack.c.bf16 %v940_v54, %v940_v54  ;;  %v949_v18 = vpack.c.bf16 %v939_v57, %v939_v57 }
 0x2ec   : > { %2049 = vmatprep.subr.msk.bf16.mxu1 %vm3573_vm3, %v950_v17  ;;  %v963_v19 = vsel %vm3573_vm3, %v949_v18, 0  ;;  %vm1069_vm3 = vcmp.lt.s32.totalorder %v2243_v4, 2 }
 0x2ed   : > { %977 = vmatpush1.bf16.msra.mxu1 %v963_v19 }
 0x2f0   : > { %2050 = vmatmul.mubr.msk.bf16.vlgmr.msra.gmra.mrb[0].mxu1 %vm3572_vm12, %v951_v22 }
 0x2f7   : > { %v956_v23 = vpop.permute.xlu0 %955 }
 0x3c3   : > { %v1002_v24 = vpop.f32.mrb[0].mxu1 }
 0x3c4   : > { %v1003_v0 = vadd.f32 %v1002_v24, %v956_v23  ;;  %v1004_v10 = vpop.f32.mrb[1].mxu1 }
 0x3c5   : > { %v1005_v11 = vadd.f32 %v1004_v10, %v956_v23  ;;  %v1006_v28 = vpop.f32.mrb[2].mxu1 }
 0x3c6   : > { %v2626_v29 = vmax.f32 %v1003_v0, 0.0  ;;  %v1007_v30 = vpop.f32.mrb[3].mxu1 }
 0x3c7   : > { %v2628_v35 = vmax.f32 %v1005_v11, 0.0 }
 0x3c8   : > { %1011 = vrot.lane.b32.xlu1 %v2626_v29, %s2113_s27 }
 0x3c9   : > { %1013 = vrot.lane.b32.xlu0 %v2628_v35, %s2113_s27 }
 0x3cc   : > { %1017 = vrot.lane.b32.xlu1 %v2626_v29, %s2112_s26 }
 0x3cd   : > { %1019 = vrot.lane.b32.xlu0 %v2628_v35, %s2112_s26 }
 0x43a   : > { %v1012_v38 = vpop.permute.xlu1 %1011 }
 0x43b   : > { %v1014_v51 = vpop.permute.xlu0 %1013 }
 0x43c   : > { %v2642_v31 = vsel %vm3568_vm7, %v1012_v38, %v1014_v51  ;;  %v2646_v34 = vsel %vm3568_vm7, %v1014_v51, %v1012_v38  ;;  %v606_v51 = vadd.s32 4294967294, %v2288_v15 }
 0x43e   : > { %v1018_v52 = vpop.permute.xlu1 %1017 }
 0x43f   : > { %v1020_v53 = vpop.permute.xlu0 %1019 }
 0x440   : > { %v2650_v58 = vsel %vm3569_vm15, %v1018_v52, %v1020_v53  ;;  %v2654_v59 = vsel %vm3569_vm15, %v1020_v53, %v1018_v52  ;;  %v607_v52 = vadd.s32 4294967294, %v2290_v16  ;;  %v2739_v53 = vadd.s32 4294967294, %v2296_v20 }
 0x441   : > { %v1027_v60 = vsel %vm700_vm13, %v2642_v31, %v2654_v59  ;;  %v1028_v61 = vsel %vm701_vm5, %v2646_v34, %v2650_v58  ;;  %vm610_vm13 = vcmp.ge.s32.totalorder %v606_v51, 0  ;;  %vm612_vm5 = vcmp.lt.s32.totalorder %v606_v51, 16 }
 0x442   : > { %v1029_v62 = vmax.f32 %v2626_v29, %v1027_v60  ;;  %v1030_v63 = vmax.f32 %v2628_v35, %v1028_v61  ;;  %v2742_v60 = vadd.s32 4294967294, %v2298_v21  ;;  %v2745_v61 = vadd.s32 2, %v2296_v20 }
 0x444   : > { %1031 = vrot.lane.b32.xlu1 %v1029_v62, %s2111_s25  ;;  %1033 = vrot.lane.b32.xlu0 %v1030_v63, %s2111_s25 }
 0x448   : > { %1037 = vrot.lane.b32.xlu1 %v1029_v62, %s2110_s24  ;;  %1039 = vrot.lane.b32.xlu0 %v1030_v63, %s2110_s24 }
 0x4b6   : > { %v1032_v8 = vpop.permute.xlu1 %1031  ;;  %v1034_v47 = vpop.permute.xlu0 %1033 }
 0x4b7   : > { %v1035_v13 = vsel %vm3622_vm11, %v1032_v8, %v1034_v47  ;;  %v1036_v14 = vsel %vm3623_vm6, %v1034_v47, %v1032_v8  ;;  %vm2747_vm11 = vmand %vm610_vm13, %vm612_vm5 }
 0x4b8   : > { %v2779_v16 = vsel %vm2747_vm11, 1.0, %v2115_v40 }
 0x4ba   : > { %v1038_v9 = vpop.permute.xlu1 %1037  ;;  %v1040_v36 = vpop.permute.xlu0 %1039 }
 0x4bb   : > { %v1041_v54 = vsel %vm3618_vm9, %v1038_v9, %v1040_v36  ;;  %v1042_v57 = vsel %vm3624_vm10, %v1040_v36, %v1038_v9  ;;  %vm3575_vm9 = vcmp.ge.s32.totalorder %v2739_v53, 0  ;;  %vm3574_vm10 = vcmp.ge.s32.totalorder %v2742_v60, 0 }
 0x4bc   : > { %v1047_v17 = vsel %vm704_vm2, %v1035_v13, %v1042_v57  ;;  %v1048_v18 = vsel %vm705_vm0, %v1036_v14, %v1041_v54  ;;  %vm611_vm2 = vcmp.ge.s32.totalorder %v607_v52, 0  ;;  %vm613_vm0 = vcmp.lt.s32.totalorder %v607_v52, 16  ;;  %vm618_vm13 = vmand %vm2747_vm11, %vm3575_vm9 }
 0x4bd   : > { %v2676_v19 = vmax.f32 %v1029_v62, %v1047_v17  ;;  %v2678_v22 = vmax.f32 %v1030_v63, %v1048_v18  ;;  %v2752_v63 = vadd.s32 2, %v2298_v21  ;;  %vm2754_vm6 = vmand %vm611_vm2, %vm613_vm0  ;;  %v666_v21 = vadd.s32 2, %v2288_v15 }
 0x4be   : > { %vm619_vm5 = vmand %vm2754_vm6, %vm3574_vm10  ;;  %vm642_vm2 = vcmp.lt.s32.totalorder %v2745_v61, 16  ;;  %v2784_v15 = vsel %vm2754_vm6, 1.0, %v2115_v40  ;;  %v2791_v47 = vsel %vm618_vm13, 1.0, %v2115_v40 }
 0x4bf   : > { %1051 = vrot.lane.b32.xlu1 %v2676_v19, %s2116_s29  ;;  %1053 = vrot.lane.b32.xlu0 %v2678_v22, %s2116_s29  ;;  %vm650_vm0 = vmand %vm2327_vm4, %vm3575_vm9  ;;  %vm643_vm7 = vcmp.lt.s32.totalorder %v2752_v63, 16  ;;  %v2794_v9 = vsel %vm619_vm5, 1.0, %v2115_v40  ;;  %vm670_vm9 = vcmp.lt.s32.totalorder %v666_v21, 16 }
 0x4c0   : > { %vm651_vm15 = vmand %vm2332_vm1, %vm3574_vm10  ;;  %v2805_v13 = vsel %vm650_vm0, 1.0, %v2115_v40  ;;  %vm668_vm10 = vcmp.ge.s32.totalorder %v666_v21, 0  ;;  %vm3641_vm0 = vcmask 588800  }
 0x4c1   : > { %vm2800_vm12 = vmand %vm2747_vm11, %vm642_vm2  ;;  %v2813_v57 = vsel %vm651_vm15, 1.0, %v2115_v40  ;;  %vm1080_vm11 = vcmp.lt.s32.totalorder %v2243_v4, 126 }
 0x4c2   : > { %vm645_vm13 = vmand %vm2754_vm6, %vm643_vm7  ;;  %v2833_v51 = vsel %vm2800_vm12, 1.0, %v2115_v40 }
 0x4c3   : > { %1058 = vrot.lane.b32.xlu1 %v2676_v19, %s2117_s30  ;;  %1060 = vrot.lane.b32.xlu0 %v2678_v22, %s2117_s30  ;;  %vm2842_vm15 = vmand %vm2327_vm4, %vm642_vm2 }
 0x4c4   : > { %vm661_vm12 = vmand %vm2332_vm1, %vm643_vm7  ;;  %vm3637_vm1 = vcmp.ge.s32.totalorder %v2739_v53, 0 }
 0x4c5   : > { %vm2864_vm4 = vmand %vm668_vm10, %vm670_vm9 }
 0x4c6   : > { %vm692_vm10 = vmand %vm2864_vm4, %vm642_vm2 }
 0x4c7   : > { %1085 = vrot.lane.b32.xlu1 %v2676_v19, %s2118_s16  ;;  %1087 = vrot.lane.b32.xlu0 %v2678_v22, %s2118_s16  ;;  %v2929_v63 = vsel %vm692_vm10, 1.0, %v2115_v40 }
 0x531   : > { %v1052_v23 = vpop.permute.xlu1 %1051  ;;  %v1054_v24 = vpop.permute.xlu0 %1053 }
 0x532   : > { %v2695_v0 = vsel %vm3571_vm8, %v1054_v24, %v1052_v23  ;;  %v2699_v10 = vsel %vm3571_vm8, %v1052_v23, %v1054_v24  ;;  %vm671_vm8 = vcmp.lt.s32.totalorder %v667_v5, 16 }
 0x533   : > { %1065 = vrot.lane.b32.xlu1 %v2695_v0, %s2118_s16  ;;  %1067 = vrot.lane.b32.xlu0 %v2699_v10, %s2118_s16  ;;  %v1074_v23 = vmul.f32 %v2779_v16, %v2695_v0  ;;  %v1075_v24 = vmul.f32 %v2784_v15, %v2699_v10 }
 0x535   : > { %v1059_v11 = vpop.permute.xlu1 %1058  ;;  %v1061_v28 = vpop.permute.xlu0 %1060 }
 0x536   : > { %v2716_v30 = vsel %vm3570_vm14, %v1061_v28, %v1059_v11  ;;  %v2720_v38 = vsel %vm3570_vm14, %v1059_v11, %v1061_v28  ;;  %vm669_vm14 = vcmp.ge.s32.totalorder %v667_v5, 0 }
 0x537   : > { %1076 = vrot.lane.b32.xlu1 %v2695_v0, %s2119_s17  ;;  %1078 = vrot.lane.b32.xlu0 %v2699_v10, %s2119_s17  ;;  %v2836_v0 = vsel %vm645_vm13, 1.0, %v2115_v40  ;;  %vm2852_vm6 = vmand %vm669_vm14, %vm671_vm8  ;;  %vm3638_vm14 = vcmp.ge.s32.totalorder %v2742_v60, 0  ;;  %v2900_v60 = vsel %vm2864_vm4, 1.0, %v2115_v40  ;;  %vm3642_vm13 = vcmp.lt.s32.totalorder %v2243_v4, 32 }
 0x538   : > { %vm674_vm8 = vmand %vm2864_vm4, %vm3637_vm1  ;;  %vm3646_vm4 = vcmp.lt.s32.totalorder %v2243_v4, 96 }
 0x539   : > { %v1086_v20 = vpop.permute.xlu1 %1085  ;;  %v1088_v8 = vpop.permute.xlu0 %1087  ;;  %vm675_vm9 = vmand %vm2852_vm6, %vm3638_vm14 }
 0x53a   : > { %vm693_vm5 = vmand %vm2852_vm6, %vm643_vm7  ;;  %vm3639_vm7 = vcmask 1043456  }
 0x53b   : > { %1093 = vrot.lane.b32.xlu1 %v2676_v19, %s2119_s17  ;;  %1095 = vrot.lane.b32.xlu0 %v2678_v22, %s2119_s17  ;;  %vm3640_vm2 = vmmov %vm3639_vm7 }
 0x53c   : > { %vm3647_vm1 = vmmov %vm3646_vm4 }
 0x53d   : > { %vm3649_vm14 = vmmov %vm3647_vm1 }
 0x53f   : > { %1103 = vrot.lane.b32.xlu0 %v2716_v30, %s2118_s16  ;;  %1101 = vrot.lane.b32.xlu1 %v2720_v38, %s2118_s16 }
 0x543   : > { %1113 = vrot.lane.b32.xlu0 %v2716_v30, %s2119_s17  ;;  %1111 = vrot.lane.b32.xlu1 %v2720_v38, %s2119_s17 }
 0x547   : > { %1140 = vperm.xlu0 %2088, %v1132_v39   ;;  %1135 = vperm.xlu1 %2089, %v1131_v48   ;;  %v1089_v39 = vsel %vm1069_vm3, %v1086_v20, %v1088_v8  ;;  %v1090_v48 = vsel %vm1069_vm3, %v1088_v8, %v1086_v20  ;;  %v2932_v8 = vsel %vm693_vm5, 1.0, %v2115_v40 }
 0x5a5   : > { %v1066_v14 = vpop.permute.xlu1 %1065  ;;  %v1068_v54 = vpop.permute.xlu0 %1067 }
 0x5a6   : > { %v1070_v17 = vsel %vm1069_vm3, %v1066_v14, %v1068_v54  ;;  %v1071_v18 = vsel %vm1069_vm3, %v1068_v54, %v1066_v14  ;;  %v1091_v14 = vmul.f32 %v2805_v13, %v1090_v48  ;;  %v1092_v54 = vmul.f32 %v2813_v57, %v1089_v39 }
 0x5a7   : > { %v1072_v11 = vmul.f32 %v2791_v47, %v1071_v18  ;;  %v1073_v28 = vmul.f32 %v2794_v9, %v1070_v17  ;;  %v2873_v18 = vsel %vm2842_vm15, 1.0, %v2115_v40  ;;  %vm3643_vm15 = vmmov %vm3642_vm13 }
 0x5a9   : > { %v1119_v52 = vpack.c.bf16 %v1074_v23, %v1072_v11  ;;  %v1077_v62 = vpop.permute.xlu1 %1076  ;;  %v1079_v3 = vpop.permute.xlu0 %1078  ;;  %v1120_v20 = vpack.c.bf16 %v1075_v24, %v1073_v28  ;;  %v2876_v23 = vsel %vm661_vm12, 1.0, %v2115_v40  ;;  %vm3644_vm12 = vmmov %vm3642_vm13 }
 0x5aa   : > { %v1081_v32 = vsel %vm1080_vm11, %v1077_v62, %v1079_v3  ;;  %v1082_v36 = vsel %vm1080_vm11, %v1079_v3, %v1077_v62  ;;  %v2903_v62 = vsel %vm674_vm8, 1.0, %v2115_v40  ;;  %v2906_v3 = vsel %vm675_vm9, 1.0, %v2115_v40  ;;  %vm3648_vm8 = vmmov %vm3647_vm1 }
 0x5ab   : > { %v1083_v5 = vmul.f32 %v2833_v51, %v1081_v32  ;;  %v1084_v17 = vmul.f32 %v2836_v0, %v1082_v36  ;;  %1157 = vmatprep.subr.bf16.mxu0 %v1120_v20  ;;  %vm1373_vm9 = vcmask 130048  }
 0x5ac   : > { %1158 = vmatpush1.bf16.msra.mxu0 %v1119_v52  ;;  %v2895_v52 = vsel %vm2852_vm6, 1.0, %v2115_v40  ;;  %vm3645_vm6 = vmmov %vm3644_vm12 }
 0x5ad   : > { %v1121_v21 = vpack.c.bf16 %v1091_v14, %v1083_v5  ;;  %v1094_v24 = vpop.permute.xlu1 %1093  ;;  %v1096_v11 = vpop.permute.xlu0 %1095  ;;  %v1122_v28 = vpack.c.bf16 %v1092_v54, %v1084_v17  ;;  %v1110_v33 = vmul.f32 %v2895_v52, %v2716_v30 }
 0x5ae   : > { %v1097_v39 = vsel %vm1080_vm11, %v1094_v24, %v1096_v11  ;;  %v1098_v48 = vsel %vm1080_vm11, %v1096_v11, %v1094_v24 }
 0x5af   : > { %v1099_v53 = vmul.f32 %v2873_v18, %v1097_v39  ;;  %v1100_v10 = vmul.f32 %v2876_v23, %v1098_v48  ;;  %1159 = vmatprep.subr.bf16.mxu0 %v1122_v28 }
 0x5b0   : > { %1160 = vmatpush1.bf16.msra.mxu0 %v1121_v21 }
 0x5b1   : > { %v1123_v20 = vpack.c.bf16 %v1099_v53, %v2676_v19  ;;  %v1102_v32 = vpop.permute.xlu1 %1101  ;;  %v1104_v36 = vpop.permute.xlu0 %1103  ;;  %v1124_v14 = vpack.c.bf16 %v1100_v10, %v2678_v22  ;;  %v1109_v19 = vmul.f32 %v2900_v60, %v2720_v38  ;;  %v2091_v10 = vld [vmem:[%s3552_s5] sm:$0xff]  }
 0x5b2   : > { %v1105_v54 = vsel %vm1069_vm3, %v1102_v32, %v1104_v36  ;;  %v1106_v61 = vsel %vm1069_vm3, %v1104_v36, %v1102_v32 }
 0x5b3   : > { %v1107_v5 = vmul.f32 %v2903_v62, %v1106_v61  ;;  %v1108_v22 = vmul.f32 %v2906_v3, %v1105_v54  ;;  %1161 = vmatprep.subr.bf16.mxu0 %v1124_v14 }
 0x5b4   : > { %1162 = vmatpush1.bf16.msra.mxu0 %v1123_v20 }
 0x5b5   : > { %v1125_v17 = vpack.c.bf16 %v1109_v19, %v1107_v5  ;;  %v1112_v21 = vpop.permute.xlu1 %1111  ;;  %v1114_v24 = vpop.permute.xlu0 %1113  ;;  %v1126_v11 = vpack.c.bf16 %v1110_v33, %v1108_v22 }
 0x5b6   : > { %v1115_v30 = vsel %vm1080_vm11, %v1112_v21, %v1114_v24  ;;  %v1116_v38 = vsel %vm1080_vm11, %v1114_v24, %v1112_v21 }
 0x5b7   : > { %v1117_v28 = vmul.f32 %v2929_v63, %v1115_v30  ;;  %v1118_v39 = vmul.f32 %v2932_v8, %v1116_v38  ;;  %1163 = vmatprep.subr.bf16.mxu0 %v1126_v11 }
 0x5b8   : > { %1164 = vmatpush1.bf16.msra.mxu0 %v1125_v17 }
 0x5b9   : > { %v1127_v48 = vpack.c.bf16 %v1117_v28, %v1117_v28  ;;  %v1128_v53 = vpack.c.bf16 %v1118_v39, %v1118_v39 }
 0x5bb   : > { %2052 = vmatprep.subr.msk.bf16.mxu0 %vm3639_vm7, %v1128_v53  ;;  %v1152_v40 = vsel %vm3640_vm2, %v1127_v48, 0 }
 0x5bc   : > { %1166 = vmatpush1.bf16.msra.mxu0 %v1152_v40 }
 0x5bf   : > { %2053 = vmatmul.mubr.msk.bf16.vlgmr.msra.gmra.mrb[4].mxu0 %vm3641_vm0, %v2091_v10  ;;  %vm3661_vm0 = vcmp.lt.s32.totalorder %v2243_v4, 112 }
 0x5c6   : > { %v1136_v20 = vpop.permute.xlu1 %1135  ;;  %v1141_v54 = vpop.permute.xlu0 %1140 }
 0x692   : > { %v1191_v32 = vpop.f32.mrb[4].mxu0 }
 0x693   : > { %v1192_v36 = vadd.f32 %v1191_v32, %v1136_v20  ;;  %v1193_v14 = vpop.f32.mrb[5].mxu0 }
 0x694   : > { %v1195_v61 = vpop.f32.mrb[6].mxu0  ;;  %v1194_v19 = vadd.f32 %v1193_v14, %v1136_v20 }
 0x695   : > { %v2946_v33 = vmax.f32 %v1192_v36, 0.0  ;;  %v1196_v5 = vadd.f32 %v1195_v61, %v1141_v54  ;;  %v1197_v22 = vpop.f32.mrb[7].mxu0 }
 0x696   : > { %v1198_v21 = vadd.f32 %v1197_v22, %v1141_v54  ;;  %v2952_v24 = vmax.f32 %v1194_v19, 0.0 }
 0x697   : > { %v2948_v17 = vmax.f32 %v1196_v5, 0.0  ;;  %1204 = vrot.lane.b32.xlu1 %v2946_v33, %s2116_s29 }
 0x698   : > { %v2956_v11 = vmax.f32 %v1198_v21, 0.0 }
 0x699   : > { %1206 = vrot.lane.b32.xlu0 %v2948_v17, %s2116_s29 }
 0x69b   : > { %1208 = vrot.lane.b32.xlu1 %v2952_v24, %s2116_s29 }
 0x69d   : > { %1210 = vrot.lane.b32.xlu0 %v2956_v11, %s2116_s29  ;;  %s3726_s29 = sshll.u32 %s3728_s19, 3 }
 0x69e   : > { %s494_s28 = scalar_lea.vmem %s3562_s15, %s3726_s29 }
 0x69f   : > { %1216 = vrot.lane.b32.xlu1 %v2946_v33, %s2117_s30 }
 0x6a1   : > { %1218 = vrot.lane.b32.xlu0 %v2948_v17, %s2117_s30 }
 0x6a3   : > { %1220 = vrot.lane.b32.xlu1 %v2952_v24, %s2117_s30 }
 0x6a5   : > { %1222 = vrot.lane.b32.xlu0 %v2956_v11, %s2117_s30 }
 0x6a7   : > { %1264 = vrot.lane.b32.xlu1 %v2946_v33, %s2118_s16 }
 0x6a9   : > { %1266 = vrot.lane.b32.xlu0 %v2948_v17, %s2118_s16 }
 0x6ab   : > { %1268 = vrot.lane.b32.xlu1 %v2952_v24, %s2118_s16 }
 0x6ad   : > { %1270 = vrot.lane.b32.xlu0 %v2956_v11, %s2118_s16 }
 0x709   : > { %v1205_v30 = vpop.permute.xlu1 %1204 }
 0x70b   : > { %v1207_v38 = vpop.permute.xlu0 %1206 }
 0x70d   : > { %v1209_v28 = vpop.permute.xlu1 %1208 }
 0x70e   : > { %v1214_v39 = vsel %vm3642_vm13, %v1209_v28, %v1205_v30  ;;  %v1212_v48 = vsel %vm3643_vm15, %v1205_v30, %v1209_v28  ;;  %vm3662_vm13 = vmmov %vm3661_vm0 }
 0x70f   : > { %1228 = vrot.lane.b32.xlu1 %v1214_v39, %s2118_s16  ;;  %v1211_v53 = vpop.permute.xlu0 %1210  ;;  %v2988_v20 = vmul.f32 %v2779_v16, %v1214_v39  ;;  %v2995_v14 = vmul.f32 %v2784_v15, %v1212_v48  ;;  %vm3663_vm15 = vmmov %vm3661_vm0 }
 0x710   : > { %v1215_v40 = vsel %vm3644_vm12, %v1211_v53, %v1207_v38  ;;  %v1213_v10 = vsel %vm3645_vm6, %v1207_v38, %v1211_v53  ;;  %vm3664_vm12 = vmmov %vm3661_vm0 }
 0x711   : > { %v1217_v32 = vpop.permute.xlu1 %1216  ;;  %1230 = vrot.lane.b32.xlu0 %v1215_v40, %s2118_s16  ;;  %v2992_v36 = vmul.f32 %v2779_v16, %v1215_v40  ;;  %v2998_v54 = vmul.f32 %v2784_v15, %v1213_v10  ;;  %vm3665_vm6 = vmmov %vm3661_vm0 }
 0x713   : > { %1232 = vrot.lane.b32.xlu1 %v1212_v48, %s2118_s16  ;;  %v1219_v19 = vpop.permute.xlu0 %1218 }
 0x715   : > { %v1221_v22 = vpop.permute.xlu1 %1220  ;;  %1234 = vrot.lane.b32.xlu0 %v1213_v10, %s2118_s16 }
 0x716   : > { %v1224_v16 = vsel %vm3646_vm4, %v1217_v32, %v1221_v22  ;;  %v1226_v21 = vsel %vm3647_vm1, %v1221_v22, %v1217_v32  ;;  %vm3666_vm4 = vmmov %vm3661_vm0  ;;  %vm1645_vm1 = vcmask 719872  }
 0x717   : > { %1248 = vrot.lane.b32.xlu1 %v1214_v39, %s2119_s17  ;;  %v1223_v15 = vpop.permute.xlu0 %1222  ;;  %v3017_v28 = vmul.f32 %v2900_v60, %v1224_v16  ;;  %v3023_v2 = vmul.f32 %v2895_v52, %v1226_v21 }
 0x718   : > { %v1225_v30 = vsel %vm3648_vm8, %v1219_v19, %v1223_v15  ;;  %v1227_v38 = vsel %vm3649_vm14, %v1223_v15, %v1219_v19  ;;  %vm3667_vm8 = vcmp.lt.s32.totalorder %v2243_v4, 1 }
 0x719   : > { %1250 = vrot.lane.b32.xlu0 %v1215_v40, %s2119_s17  ;;  %v3020_v53 = vmul.f32 %v2900_v60, %v1225_v30  ;;  %v3026_v39 = vmul.f32 %v2895_v52, %v1227_v38  ;;  %v2092_v52 = vld [vmem:[%s3554_s7 + $0x4] ss:$8 sps:$4 sm:$0xff]   ;;  %vm3668_vm14 = vmmov %vm3667_vm8 }
 0x71a   : > { %2056 = vmatprep.mubr.msk.bf16.mxu1 %vm1373_vm9, %v2092_v52  ;;  %v1352_v60 = vld [vmem:[%s3555_s8] sm:$0xff]  ;;  %vm3669_vm9 = vmmov %vm3667_vm8 }
 0x71b   : > { %1252 = vrot.lane.b32.xlu1 %v1212_v48, %s2119_s17  ;;  %v1353_v48 = vld [vmem:[%s3555_s8 + $0x8] sm:$0xff]  ;;  %v1267_v19 = vpop.permute.xlu0 %1266 }
 0x71d   : > { %1254 = vrot.lane.b32.xlu0 %v1213_v10, %s2119_s17  ;;  %v1265_v10 = vpop.permute.xlu1 %1264 }
 0x71f   : > { %1280 = vrot.lane.b32.xlu1 %v2946_v33, %s2119_s17 }
 0x721   : > { %1282 = vrot.lane.b32.xlu0 %v2948_v17, %s2119_s17  ;;  %v1269_v22 = vpop.permute.xlu1 %1268 }
 0x723   : > { %1284 = vrot.lane.b32.xlu1 %v2952_v24, %s2119_s17 }
 0x725   : > { %1286 = vrot.lane.b32.xlu0 %v2956_v11, %s2119_s17 }
 0x727   : > { %1296 = vrot.lane.b32.xlu1 %v1224_v16, %s2118_s16 }
 0x729   : > { %1298 = vrot.lane.b32.xlu0 %v1225_v30, %s2118_s16 }
 0x72b   : > { %1300 = vrot.lane.b32.xlu1 %v1226_v21, %s2118_s16 }
 0x72d   : > { %1302 = vrot.lane.b32.xlu0 %v1227_v38, %s2118_s16 }
 0x72f   : > { %1316 = vrot.lane.b32.xlu1 %v1224_v16, %s2119_s17  ;;  %v1271_v16 = vpop.permute.xlu0 %1270 }
 0x731   : > { %1318 = vrot.lane.b32.xlu0 %v1225_v30, %s2119_s17 }
 0x733   : > { %1320 = vrot.lane.b32.xlu1 %v1226_v21, %s2119_s17 }
 0x735   : > { %1322 = vrot.lane.b32.xlu0 %v1227_v38, %s2119_s17 }
 0x737   : > { %1356 = vperm.xlu1 %2089, %v1352_v60  }
 0x739   : > { %1361 = vperm.xlu0 %2088, %v1353_v48  }
 0x781   : > { %v1229_v15 = vpop.permute.xlu1 %1228 }
 0x783   : > { %v1231_v30 = vpop.permute.xlu0 %1230 }
 0x785   : > { %v1233_v52 = vpop.permute.xlu1 %1232 }
 0x786   : > { %v1236_v21 = vsel %vm1069_vm3, %v1229_v15, %v1233_v52  ;;  %v1238_v12 = vsel %vm1069_vm3, %v1233_v52, %v1229_v15  ;;  %v1273_v15 = vsel %vm1069_vm3, %v1267_v19, %v1271_v16 }
 0x787   : > { %v1235_v38 = vpop.permute.xlu0 %1234  ;;  %v1240_v48 = vmul.f32 %v2791_v47, %v1238_v12  ;;  %v1241_v40 = vmul.f32 %v2794_v9, %v1236_v21 }
 0x788   : > { %v1237_v32 = vsel %vm1069_vm3, %v1231_v30, %v1235_v38  ;;  %v1239_v60 = vsel %vm1069_vm3, %v1235_v38, %v1231_v30 }
 0x789   : > { %v1242_v61 = vmul.f32 %v2791_v47, %v1239_v60  ;;  %v1243_v5 = vmul.f32 %v2794_v9, %v1237_v32  ;;  %v1249_v1 = vpop.permute.xlu1 %1248  ;;  %v1272_v47 = vsel %vm1069_vm3, %v1265_v10, %v1269_v22  ;;  %v3650_v9 = vpack.c.bf16 %v2998_v54, %v2995_v14 }
 0x78a   : > { %v1277_v38 = vmul.f32 %v2813_v57, %v1272_v47  ;;  %v1341_v47 = vpack.c.bf16 %v2956_v11, %v2952_v24 }
 0x78b   : > { %v1332_v26 = vpack.c.bf16 %v1242_v61, %v1240_v48  ;;  %v1251_v27 = vpop.permute.xlu0 %1250  ;;  %v1333_v37 = vpack.c.bf16 %v1243_v5, %v1241_v40  ;;  %v1275_v5 = vsel %vm1069_vm3, %v1271_v16, %v1267_v19  ;;  %v3651_v19 = vpack.c.bf16 %v2992_v36, %v2988_v20 }
 0x78c   : > { %v1274_v16 = vsel %vm1069_vm3, %v1269_v22, %v1265_v10 }
 0x78d   : > { %v1253_v52 = vpop.permute.xlu1 %1252  ;;  %1377 = vmatprep.subr.bf16.mxu1 %v1333_v37  ;;  %v1279_v37 = vmul.f32 %v2813_v57, %v1273_v15  ;;  %v1278_v15 = vmul.f32 %v2805_v13, %v1275_v5 }
 0x78e   : > { %v1256_v30 = vsel %vm1080_vm11, %v1249_v1, %v1253_v52  ;;  %v1258_v12 = vsel %vm1080_vm11, %v1253_v52, %v1249_v1  ;;  %1378 = vmatpush1.bf16.msra.mxu1 %v1332_v26 }
 0x78f   : > { %1379 = vmatprep.subr.bf16.mxu1 %v3650_v9  ;;  %v1255_v61 = vpop.permute.xlu0 %1254  ;;  %v1260_v26 = vmul.f32 %v2833_v51, %v1256_v30  ;;  %v1261_v40 = vmul.f32 %v2836_v0, %v1258_v12 }
 0x790   : > { %v1257_v32 = vsel %vm1080_vm11, %v1251_v27, %v1255_v61  ;;  %v1259_v1 = vsel %vm1080_vm11, %v1255_v61, %v1251_v27 }
 0x791   : > { %v1262_v21 = vmul.f32 %v2833_v51, %v1257_v32  ;;  %v1263_v14 = vmul.f32 %v2836_v0, %v1259_v1  ;;  %v1281_v54 = vpop.permute.xlu1 %1280  ;;  %v1339_v51 = vpack.c.bf16 %v1279_v37, %v1277_v38  ;;  %v1276_v0 = vmul.f32 %v2805_v13, %v1274_v16 }
 0x792   : > { %1380 = vmatpush1.bf16.msra.mxu1 %v3651_v19  ;;  %v1340_v37 = vpack.c.bf16 %v2948_v17, %v2946_v33 }
 0x793   : > { %v1336_v60 = vpack.c.bf16 %v1262_v21, %v1260_v26  ;;  %v1283_v27 = vpop.permute.xlu0 %1282  ;;  %v1337_v48 = vpack.c.bf16 %v1263_v14, %v1261_v40  ;;  %v1338_v20 = vpack.c.bf16 %v1278_v15, %v1276_v0 }
 0x795   : > { %v1285_v52 = vpop.permute.xlu1 %1284  ;;  %1381 = vmatprep.subr.bf16.mxu1 %v1337_v48 }
 0x796   : > { %1382 = vmatpush1.bf16.msra.mxu1 %v1336_v60  ;;  %v1290_v36 = vsel %vm1080_vm11, %v1285_v52, %v1281_v54  ;;  %v1288_v13 = vsel %vm1080_vm11, %v1281_v54, %v1285_v52 }
 0x797   : > { %1383 = vmatprep.subr.bf16.mxu1 %v1339_v51  ;;  %v1287_v30 = vpop.permute.xlu0 %1286  ;;  %v1293_v9 = vmul.f32 %v2876_v23, %v1290_v36  ;;  %v1292_v26 = vmul.f32 %v2873_v18, %v1288_v13 }
 0x798   : > { %v1291_v57 = vsel %vm1080_vm11, %v1287_v30, %v1283_v27  ;;  %v1289_v10 = vsel %vm1080_vm11, %v1283_v27, %v1287_v30 }
 0x799   : > { %v1295_v22 = vmul.f32 %v2876_v23, %v1291_v57  ;;  %v1297_v12 = vpop.permute.xlu1 %1296  ;;  %v1294_v5 = vmul.f32 %v2873_v18, %v1289_v10  ;;  %v3653_v57 = vpack.c.bf16 %v3020_v53, %v3017_v28  ;;  %v2094_v10 = vld [vmem:[%s3554_s7] ss:$8 sps:$4 sm:$0xff]  }
 0x79a   : > { %1384 = vmatpush1.bf16.msra.mxu1 %v1338_v20 }
 0x79b   : > { %1385 = vmatprep.subr.bf16.mxu1 %v1341_v47  ;;  %v1299_v61 = vpop.permute.xlu0 %1298  ;;  %v1343_v1 = vpack.c.bf16 %v1295_v22, %v1293_v9  ;;  %v1342_v23 = vpack.c.bf16 %v1294_v5, %v1292_v26  ;;  %v3654_v22 = vmov 0  }
 0x79d   : > { %v1301_v32 = vpop.permute.xlu1 %1300 }
 0x79e   : > { %v1304_v24 = vsel %vm1069_vm3, %v1297_v12, %v1301_v32  ;;  %v1306_v11 = vsel %vm1069_vm3, %v1301_v32, %v1297_v12  ;;  %1386 = vmatpush1.bf16.msra.mxu1 %v1340_v37 }
 0x79f   : > { %v1303_v40 = vpop.permute.xlu0 %1302  ;;  %1387 = vmatprep.subr.bf16.mxu1 %v1343_v1  ;;  %v1308_v17 = vmul.f32 %v2903_v62, %v1306_v11  ;;  %v1309_v18 = vmul.f32 %v2906_v3, %v1304_v24 }
 0x7a0   : > { %v1305_v21 = vsel %vm1069_vm3, %v1299_v61, %v1303_v40  ;;  %v1307_v33 = vsel %vm1069_vm3, %v1303_v40, %v1299_v61  ;;  %vm3655_vm3 = vcmp.lt.s32.totalorder %v2243_v4, 16 }
 0x7a1   : > { %v1310_v14 = vmul.f32 %v2903_v62, %v1307_v33  ;;  %v1311_v54 = vmul.f32 %v2906_v3, %v1305_v21  ;;  %v1317_v19 = vpop.permute.xlu1 %1316  ;;  %v3652_v62 = vpack.c.bf16 %v3026_v39, %v3023_v2  ;;  %vm3657_vm10 = vmmov %vm3655_vm3 }
 0x7a2   : > { %1388 = vmatpush1.bf16.msra.mxu1 %v1342_v23  ;;  %vm3658_vm5 = vmmov %vm3655_vm3 }
 0x7a3   : > { %v1344_v16 = vpack.c.bf16 %v1310_v14, %v1308_v17  ;;  %v1319_v38 = vpop.permute.xlu0 %1318  ;;  %v1345_v60 = vpack.c.bf16 %v1311_v54, %v1309_v18  ;;  %vm3659_vm7 = vmmov %vm3655_vm3 }
 0x7a4   : > { %vm3660_vm2 = vmmov %vm3655_vm3 }
 0x7a5   : > { %v1321_v27 = vpop.permute.xlu1 %1320  ;;  %1389 = vmatprep.subr.bf16.mxu1 %v1345_v60 }
 0x7a6   : > { %v1324_v48 = vsel %vm1080_vm11, %v1317_v19, %v1321_v27  ;;  %v1326_v15 = vsel %vm1080_vm11, %v1321_v27, %v1317_v19  ;;  %1390 = vmatpush1.bf16.msra.mxu1 %v1344_v16 }
 0x7a7   : > { %v1323_v52 = vpop.permute.xlu0 %1322  ;;  %1391 = vmatprep.subr.bf16.mxu1 %v3652_v62  ;;  %v1328_v0 = vmul.f32 %v2929_v63, %v1324_v48  ;;  %v1329_v30 = vmul.f32 %v2932_v8, %v1326_v15 }
 0x7a8   : > { %v1325_v3 = vsel %vm1080_vm11, %v1319_v38, %v1323_v52  ;;  %v1327_v51 = vsel %vm1080_vm11, %v1323_v52, %v1319_v38  ;;  %vm3656_vm11 = vmmov %vm3655_vm3 }
 0x7a9   : > { %v1330_v20 = vmul.f32 %v2929_v63, %v1325_v3  ;;  %v1331_v36 = vmul.f32 %v2932_v8, %v1327_v51 }
 0x7aa   : > { %1392 = vmatpush1.bf16.msra.mxu1 %v3653_v57 }
 0x7ab   : > { %v1348_v2 = vpack.c.bf16 %v1330_v20, %v1328_v0  ;;  %v1349_v39 = vpack.c.bf16 %v1331_v36, %v1329_v30 }
 0x7ad   : > { %1393 = vmatprep.subr.bf16.mxu1 %v1349_v39 }
 0x7ae   : > { %1394 = vmatpush1.bf16.msra.mxu1 %v1348_v2 }
 0x7b1   : > { %1410 = vmatmul.mubr.bf16.vlgmr.msra.gmra.mrb[4].mxu1 %v2094_v10 }
 0x7b2   : > { %1820 = vmatprep.mubr.bf16.mxu1 %v3654_v22 }
 0x7b6   : > { %v1357_v12 = vpop.permute.xlu1 %1356 }
 0x7b8   : > { %v1362_v8 = vpop.permute.xlu0 %1361 }
 0x884   : > { %v1411_v47 = vpop.f32.mrb[4].mxu1 }
 0x885   : > { %v1412_v63 = vadd.f32 %v1411_v47, %v1357_v12  ;;  %v1413_v13 = vpop.f32.mrb[5].mxu1 }
 0x886   : > { %v1415_v9 = vpop.f32.mrb[6].mxu1  ;;  %v1414_v28 = vadd.f32 %v1413_v13, %v1357_v12 }
 0x887   : > { %v3151_v61 = vmax.f32 %v1412_v63, 0.0  ;;  %v1416_v53 = vadd.f32 %v1415_v9, %v1362_v8  ;;  %v1417_v5 = vpop.f32.mrb[7].mxu1 }
 0x888   : > { %v1418_v32 = vadd.f32 %v1417_v5, %v1362_v8  ;;  %v3157_v1 = vmax.f32 %v1414_v28, 0.0 }
 0x889   : > { %v3153_v37 = vmax.f32 %v1416_v53, 0.0  ;;  %1424 = vrot.lane.b32.xlu1 %v3151_v61, %s2110_s24  ;;  %v3293_v53 = vld [vmem:[%s3556_s9] sm:$0xff] }
 0x88a   : > { %v3161_v26 = vmax.f32 %v1418_v32, 0.0  ;;  %v2058_v5 = vcombine.high %v3293_v53, %v3293_v53  ;;  %v1633_v32 = vld [vmem:[%s3557_s10] sm:$0xff] }
 0x88b   : > { %1426 = vrot.lane.b32.xlu0 %v3153_v37, %s2110_s24 }
 0x88c   : > { %2060 = vmatprep.mubr.msk.bf16.mxu0 %vm1645_vm1, %v2058_v5 }
 0x88d   : > { %1428 = vrot.lane.b32.xlu1 %v3157_v1, %s2110_s24 }
 0x88f   : > { %1430 = vrot.lane.b32.xlu0 %v3161_v26, %s2110_s24 }
 0x891   : > { %1448 = vrot.lane.b32.xlu1 %v2626_v29, %s2110_s24 }
 0x893   : > { %1450 = vrot.lane.b32.xlu0 %v2628_v35, %s2110_s24 }
 0x895   : > { %1436 = vrot.lane.b32.xlu1 %v3151_v61, %s2111_s25 }
 0x897   : > { %1438 = vrot.lane.b32.xlu0 %v3153_v37, %s2111_s25 }
 0x899   : > { %1440 = vrot.lane.b32.xlu1 %v3157_v1, %s2111_s25 }
 0x89b   : > { %1442 = vrot.lane.b32.xlu0 %v3161_v26, %s2111_s25 }
 0x89d   : > { %1454 = vrot.lane.b32.xlu1 %v2626_v29, %s2111_s25 }
 0x89f   : > { %1456 = vrot.lane.b32.xlu0 %v2628_v35, %s2111_s25 }
 0x8fb   : > { %v1425_v24 = vpop.permute.xlu1 %1424 }
 0x8fd   : > { %v1427_v11 = vpop.permute.xlu0 %1426 }
 0x8ff   : > { %v1429_v40 = vpop.permute.xlu1 %1428 }
 0x900   : > { %v3211_v62 = vsel %vm3659_vm7, %v1429_v40, %v1425_v24  ;;  %v3218_v0 = vsel %vm3660_vm2, %v1425_v24, %v1429_v40 }
 0x901   : > { %v1431_v23 = vpop.permute.xlu0 %1430 }
 0x902   : > { %v1435_v21 = vsel %vm3655_vm3, %v1431_v23, %v1427_v11  ;;  %v1433_v17 = vsel %vm3656_vm11, %v1427_v11, %v1431_v23  ;;  %vm3670_vm3 = vmmov %vm3667_vm8 }
 0x903   : > { %v1449_v33 = vpop.permute.xlu1 %1448  ;;  %v3188_v14 = vmul.f32 %v2376_v41, %v1435_v21  ;;  %v3195_v16 = vmul.f32 %v2391_v43, %v1433_v17  ;;  %vm3671_vm11 = vmmov %vm3670_vm3 }
 0x904   : > { %vm3682_vm1 = vmmov %vm3670_vm3 }
 0x905   : > { %v1451_v18 = vpop.permute.xlu0 %1450 }
 0x906   : > { %v1452_v54 = vsel %vm3657_vm10, %v1449_v33, %v1451_v18  ;;  %v1453_v19 = vsel %vm3658_vm5, %v1451_v18, %v1449_v33  ;;  %vm3672_vm10 = vmmov %vm3670_vm3  ;;  %vm3673_vm5 = vcmp.lt.s32.totalorder %v2243_v4, 127 }
 0x907   : > { %v3198_v38 = vmul.f32 %v2376_v41, %v1453_v19  ;;  %v3201_v60 = vmul.f32 %v2391_v43, %v1452_v54  ;;  %1476 = vrot.lane.b32.xlu1 %v1453_v19, %s2112_s26  ;;  %1478 = vrot.lane.b32.xlu0 %v1452_v54, %s2112_s26  ;;  %v1437_v27 = vpop.permute.xlu1 %1436  ;;  %vm3674_vm7 = vmmov %vm3673_vm5 }
 0x908   : > { %vm3675_vm2 = vmmov %vm3673_vm5 }
 0x909   : > { %v1608_v48 = vpack.c.bf16 %v3198_v38, %v3188_v14  ;;  %v1439_v15 = vpop.permute.xlu0 %1438  ;;  %v1609_v52 = vpack.c.bf16 %v3201_v60, %v3195_v16 }
 0x90b   : > { %1460 = vrot.lane.b32.xlu1 %v3211_v62, %s2112_s26  ;;  %1462 = vrot.lane.b32.xlu0 %v1435_v21, %s2112_s26  ;;  %v1441_v3 = vpop.permute.xlu1 %1440 }
 0x90c   : > { %v3273_v9 = vsel %vm3665_vm6, %v1437_v27, %v1441_v3  ;;  %v3280_v28 = vsel %vm3666_vm4, %v1441_v3, %v1437_v27  ;;  %vm3680_vm6 = vmmov %vm3670_vm3 }
 0x90d   : > { %v1443_v51 = vpop.permute.xlu0 %1442  ;;  %vm3681_vm4 = vmmov %vm3670_vm3 }
 0x90e   : > { %v1445_v30 = vsel %vm3661_vm0, %v1439_v15, %v1443_v51  ;;  %v1447_v20 = vsel %vm3662_vm13, %v1443_v51, %v1439_v15  ;;  %vm3676_vm0 = vmmov %vm3675_vm2 }
 0x90f   : > { %1464 = vrot.lane.b32.xlu1 %v3218_v0, %s2112_s26  ;;  %1466 = vrot.lane.b32.xlu0 %v1433_v17, %s2112_s26  ;;  %v1455_v36 = vpop.permute.xlu1 %1454  ;;  %v3228_v2 = vmul.f32 %v2382_v42, %v1445_v30  ;;  %v3235_v12 = vmul.f32 %v2396_v44, %v1447_v20  ;;  %vm3677_vm13 = vmmov %vm3676_vm0 }
 0x911   : > { %v1457_v57 = vpop.permute.xlu0 %1456 }
 0x912   : > { %v1458_v39 = vsel %vm3663_vm15, %v1455_v36, %v1457_v57  ;;  %v1459_v10 = vsel %vm3664_vm12, %v1457_v57, %v1455_v36  ;;  %v1485_v57 = vmul.f32 %v2391_v43, %v3218_v0  ;;  %vm3678_vm15 = vmmov %vm3676_vm0 }
 0x913   : > { %v3238_v47 = vmul.f32 %v2382_v42, %v1458_v39  ;;  %v3241_v63 = vmul.f32 %v2396_v44, %v1459_v10  ;;  %1506 = vrot.lane.b32.xlu1 %v1453_v19, %s2113_s27  ;;  %1508 = vrot.lane.b32.xlu0 %v1452_v54, %s2113_s27  ;;  %vm3679_vm12 = vmmov %vm3670_vm3 }
 0x915   : > { %v1626_v13 = vpack.c.bf16 %v3238_v47, %v3228_v2  ;;  %v1627_v8 = vpack.c.bf16 %v3241_v63, %v3235_v12  ;;  %v2057_v47 = vcombine.low %v3293_v53, %v3293_v53 }
 0x917   : > { %1490 = vrot.lane.b32.xlu1 %v3211_v62, %s2113_s27  ;;  %1492 = vrot.lane.b32.xlu0 %v1435_v21, %s2113_s27 }
 0x91b   : > { %1494 = vrot.lane.b32.xlu1 %v3218_v0, %s2113_s27  ;;  %1496 = vrot.lane.b32.xlu0 %v1433_v17, %s2113_s27 }
 0x91f   : > { %1514 = vrot.lane.b32.xlu1 %v3151_v61, %s2112_s26  ;;  %1518 = vrot.lane.b32.xlu0 %v3157_v1, %s2112_s26 }
 0x923   : > { %1516 = vrot.lane.b32.xlu1 %v3153_v37, %s2112_s26  ;;  %1520 = vrot.lane.b32.xlu0 %v3161_v26, %s2112_s26 }
 0x927   : > { %1532 = vrot.lane.b32.xlu1 %v3151_v61, %s2113_s27  ;;  %1536 = vrot.lane.b32.xlu0 %v3157_v1, %s2113_s27 }
 0x92b   : > { %1534 = vrot.lane.b32.xlu1 %v3153_v37, %s2113_s27  ;;  %1538 = vrot.lane.b32.xlu0 %v3161_v26, %s2113_s27 }
 0x92f   : > { %1552 = vrot.lane.b32.xlu0 %v1445_v30, %s2112_s26  ;;  %1550 = vrot.lane.b32.xlu1 %v3273_v9, %s2112_s26 }
 0x933   : > { %1556 = vrot.lane.b32.xlu0 %v1447_v20, %s2112_s26  ;;  %1554 = vrot.lane.b32.xlu1 %v3280_v28, %s2112_s26 }
 0x937   : > { %1568 = vrot.lane.b32.xlu0 %v1459_v10, %s2112_s26  ;;  %1566 = vrot.lane.b32.xlu1 %v1458_v39, %s2112_s26 }
 0x93b   : > { %1582 = vrot.lane.b32.xlu0 %v1445_v30, %s2113_s27  ;;  %1580 = vrot.lane.b32.xlu1 %v3273_v9, %s2113_s27 }
 0x93f   : > { %1586 = vrot.lane.b32.xlu0 %v1447_v20, %s2113_s27  ;;  %1584 = vrot.lane.b32.xlu1 %v3280_v28, %s2113_s27 }
 0x943   : > { %1598 = vrot.lane.b32.xlu0 %v1459_v10, %s2113_s27  ;;  %1596 = vrot.lane.b32.xlu1 %v1458_v39, %s2113_s27 }
 0x947   : > { %1636 = vperm.xlu1 %2089, %v1633_v32  }
 0x979   : > { %v1479_v24 = vpop.permute.xlu0 %1478  ;;  %v1477_v11 = vpop.permute.xlu1 %1476 }
 0x97a   : > { %v1480_v21 = vsel %vm3667_vm8, %v1477_v11, %v1479_v24  ;;  %v1481_v33 = vsel %vm3668_vm14, %v1479_v24, %v1477_v11  ;;  %vm3683_vm8 = vmmov %vm3676_vm0 }
 0x97b   : > { %v1483_v17 = vmul.f32 %v2436_v56, %v1480_v21  ;;  %v1482_v24 = vmul.f32 %v2433_v55, %v1481_v33  ;;  %vm3684_vm14 = vmmov %vm3676_vm0 }
 0x97d   : > { %v1463_v40 = vpop.permute.xlu0 %1462  ;;  %v1461_v23 = vpop.permute.xlu1 %1460  ;;  %v1607_v11 = vpack.c.bf16 %v1485_v57, %v1483_v17 }
 0x981   : > { %v1467_v18 = vpop.permute.xlu0 %1466  ;;  %v1465_v54 = vpop.permute.xlu1 %1464 }
 0x982   : > { %v1469_v19 = vsel %vm3669_vm9, %v1463_v40, %v1467_v18  ;;  %v1471_v27 = vsel %vm3670_vm3, %v1467_v18, %v1463_v40  ;;  %v1468_v15 = vsel %vm3671_vm11, %v1461_v23, %v1465_v54  ;;  %v1470_v3 = vsel %vm3672_vm10, %v1465_v54, %v1461_v23  ;;  %vm3685_vm9 = vmmov %vm3676_vm0 }
 0x983   : > { %v1474_v51 = vmul.f32 %v2433_v55, %v1471_v27  ;;  %v1475_v30 = vmul.f32 %v2436_v56, %v1469_v19  ;;  %v1472_v20 = vmul.f32 %v2433_v55, %v1470_v3  ;;  %v1473_v36 = vmul.f32 %v2436_v56, %v1468_v15  ;;  %vm3686_vm3 = vmmov %vm3676_vm0 }
 0x984   : > { %v1484_v40 = vmul.f32 %v2376_v41, %v3211_v62  ;;  %vm3687_vm11 = vmmov %vm3682_vm1 }
 0x985   : > { %v1604_v39 = vpack.c.bf16 %v1474_v51, %v1472_v20  ;;  %v1509_v10 = vpop.permute.xlu0 %1508  ;;  %v1507_v5 = vpop.permute.xlu1 %1506  ;;  %v1605_v32 = vpack.c.bf16 %v1475_v30, %v1473_v36  ;;  %vm3688_vm10 = vmmov %vm3682_vm1 }
 0x986   : > { %v1606_v18 = vpack.c.bf16 %v1484_v40, %v1482_v24  ;;  %v1511_v3 = vsel %vm3678_vm15, %v1509_v10, %v1507_v5  ;;  %vm3695_vm15 = vmmov %vm3686_vm3 }
 0x987   : > { %1655 = vmatprep.subr.bf16.mxu0 %v1605_v32  ;;  %v1513_v24 = vmul.f32 %v2460_v7, %v1511_v3 }
 0x988   : > { %1656 = vmatpush1.bf16.msra.mxu0 %v1604_v39 }
 0x989   : > { %v1493_v23 = vpop.permute.xlu0 %1492  ;;  %1657 = vmatprep.subr.bf16.mxu0 %v1607_v11  ;;  %v1491_v21 = vpop.permute.xlu1 %1490 }
 0x98c   : > { %1658 = vmatpush1.bf16.msra.mxu0 %v1606_v18  ;;  %v1531_v18 = vmul.f32 %v2404_v46, %v2650_v58  ;;  %v1617_v58 = vpack.c.bf16 %v3161_v26, %v3157_v1  ;;  %v1549_v1 = vmul.f32 %v2416_v50, %v2646_v34 }
 0x98d   : > { %v1497_v54 = vpop.permute.xlu0 %1496  ;;  %1659 = vmatprep.subr.bf16.mxu0 %v1609_v52  ;;  %v1495_v0 = vpop.permute.xlu1 %1494  ;;  %v1510_v52 = vsel %vm3677_vm13, %v1507_v5, %v1509_v10  ;;  %vm3694_vm13 = vmmov %vm3686_vm3 }
 0x98e   : > { %v1499_v33 = vsel %vm3673_vm5, %v1493_v23, %v1497_v54  ;;  %v1501_v17 = vsel %vm3674_vm7, %v1497_v54, %v1493_v23  ;;  %v1498_v62 = vsel %vm3675_vm2, %v1491_v21, %v1495_v0  ;;  %v1500_v19 = vsel %vm3676_vm0, %v1495_v0, %v1491_v21  ;;  %vm3689_vm5 = vmmov %vm3682_vm1 }
 0x98f   : > { %v1504_v27 = vmul.f32 %v2457_v6, %v1499_v33  ;;  %v1505_v15 = vmul.f32 %v2460_v7, %v1501_v17  ;;  %v1502_v16 = vmul.f32 %v2457_v6, %v1498_v62  ;;  %v1503_v60 = vmul.f32 %v2460_v7, %v1500_v19  ;;  %vm3690_vm7 = vmmov %vm3682_vm1 }
 0x990   : > { %1660 = vmatpush1.bf16.msra.mxu0 %v1608_v48  ;;  %v1512_v32 = vmul.f32 %v2457_v6, %v1510_v52  ;;  %v1530_v21 = vmul.f32 %v2401_v45, %v2654_v59  ;;  %vm3692_vm2 = vmmov %vm3682_vm1 }
 0x991   : > { %v1610_v51 = vpack.c.bf16 %v1504_v27, %v1502_v16  ;;  %v1519_v30 = vpop.permute.xlu0 %1518  ;;  %v1515_v20 = vpop.permute.xlu1 %1514  ;;  %v1611_v36 = vpack.c.bf16 %v1505_v15, %v1503_v60  ;;  %vm3693_vm0 = vmmov %vm3682_vm1 }
 0x992   : > { %v1522_v57 = vsel %vm3679_vm12, %v1515_v20, %v1519_v30  ;;  %v1524_v39 = vsel %vm3680_vm6, %v1519_v30, %v1515_v20  ;;  %v1616_v30 = vpack.c.bf16 %v3153_v37, %v3151_v61  ;;  %vm3696_vm12 = vmmov %vm3686_vm3 }
 0x993   : > { %v1526_v10 = vmul.f32 %v2401_v45, %v1524_v39  ;;  %v1527_v5 = vmul.f32 %v2404_v46, %v1522_v57  ;;  %1661 = vmatprep.subr.bf16.mxu0 %v1611_v36  ;;  %vm3697_vm6 = vmmov %vm3686_vm3 }
 0x994   : > { %1662 = vmatpush1.bf16.msra.mxu0 %v1610_v51 }
 0x995   : > { %v1612_v14 = vpack.c.bf16 %v1526_v10, %v1512_v32  ;;  %v1521_v38 = vpop.permute.xlu0 %1520  ;;  %v1517_v48 = vpop.permute.xlu1 %1516  ;;  %v1613_v11 = vpack.c.bf16 %v1527_v5, %v1513_v24  ;;  %v1548_v24 = vmul.f32 %v2413_v49, %v2642_v31 }
 0x996   : > { %v1523_v40 = vsel %vm3681_vm4, %v1517_v48, %v1521_v38  ;;  %v1525_v23 = vsel %vm3682_vm1, %v1521_v38, %v1517_v48  ;;  %v3691_v38 = vld [vmem:[#allocation3_spill] sm:$0xff]  ;;  %vm3700_vm4 = vmmov %vm3686_vm3 }
 0x997   : > { %v1528_v54 = vmul.f32 %v2401_v45, %v1525_v23  ;;  %v1529_v0 = vmul.f32 %v2404_v46, %v1523_v40  ;;  %1663 = vmatprep.subr.bf16.mxu0 %v1613_v11  ;;  %vm3701_vm1 = vmmov %vm3686_vm3 }
 0x998   : > { %1664 = vmatpush1.bf16.msra.mxu0 %v1612_v14 }
 0x999   : > { %v1614_v33 = vpack.c.bf16 %v1530_v21, %v1528_v54  ;;  %v1537_v17 = vpop.permute.xlu0 %1536  ;;  %v1533_v62 = vpop.permute.xlu1 %1532  ;;  %v1615_v19 = vpack.c.bf16 %v1531_v18, %v1529_v0 }
 0x99a   : > { %v1542_v27 = vsel %vm3683_vm8, %v1537_v17, %v1533_v62  ;;  %v1540_v15 = vsel %vm3684_vm14, %v1533_v62, %v1537_v17  ;;  %v1574_v17 = vmul.f32 %v2382_v42, %v3273_v9  ;;  %v1575_v62 = vmul.f32 %v2396_v44, %v3280_v28 }
 0x99b   : > { %v1545_v59 = vmul.f32 %v2416_v50, %v1542_v27  ;;  %1665 = vmatprep.subr.bf16.mxu0 %v1615_v19  ;;  %v1544_v52 = vmul.f32 %v2413_v49, %v1540_v15  ;;  %vm3702_vm8 = vcmask 1043456  }
 0x99c   : > { %1666 = vmatpush1.bf16.msra.mxu0 %v1614_v33  ;;  %vm3703_vm14 = vmmov %vm3702_vm8 }
 0x99d   : > { %v1539_v16 = vpop.permute.xlu0 %1538  ;;  %1667 = vmatprep.subr.bf16.mxu0 %v1617_v58  ;;  %v1535_v60 = vpop.permute.xlu1 %1534  ;;  %v1619_v36 = vpack.c.bf16 %v1545_v59, %v2628_v35  ;;  %v1618_v32 = vpack.c.bf16 %v1544_v52, %v2626_v29 }
 0x99e   : > { %v1541_v3 = vsel %vm3685_vm9, %v1535_v60, %v1539_v16  ;;  %v1543_v51 = vsel %vm3686_vm3, %v1539_v16, %v1535_v60  ;;  %vm3704_vm9 = vcmp.lt.s32.totalorder %v2243_v4, 16 }
 0x99f   : > { %v1547_v20 = vmul.f32 %v2416_v50, %v1543_v51  ;;  %v1546_v26 = vmul.f32 %v2413_v49, %v1541_v3  ;;  %vm3705_vm3 = vmmov %vm3704_vm9 }
 0x9a0   : > { %1668 = vmatpush1.bf16.msra.mxu0 %v1616_v30  ;;  %v3698_v30 = vld [vmem:[#allocation5_spill] sm:$0xff] }
 0x9a1   : > { %v1553_v57 = vpop.permute.xlu0 %1552  ;;  %v1551_v39 = vpop.permute.xlu1 %1550  ;;  %1669 = vmatprep.subr.bf16.mxu0 %v1619_v36  ;;  %v1621_v10 = vpack.c.bf16 %v1549_v1, %v1547_v20  ;;  %v1620_v61 = vpack.c.bf16 %v1548_v24, %v1546_v26  ;;  %v3699_v36 = vld [vmem:[#allocation4_spill] sm:$0xff] }
 0x9a4   : > { %1670 = vmatpush1.bf16.msra.mxu0 %v1618_v32 }
 0x9a5   : > { %v1557_v37 = vpop.permute.xlu0 %1556  ;;  %v1555_v5 = vpop.permute.xlu1 %1554  ;;  %1671 = vmatprep.subr.bf16.mxu0 %v1621_v10 }
 0x9a6   : > { %v1559_v35 = vsel %vm3687_vm11, %v1553_v57, %v1557_v37  ;;  %v1561_v34 = vsel %vm3688_vm10, %v1557_v37, %v1553_v57  ;;  %v1558_v14 = vsel %vm3689_vm5, %v1551_v39, %v1555_v5  ;;  %v1560_v29 = vsel %vm3690_vm7, %v1555_v5, %v1551_v39  ;;  %vm3708_vm5 = vmmov %vm3693_vm0 }
 0x9a7   : > { %v1564_v31 = vmul.f32 %v2488_v25, %v1561_v34  ;;  %v1565_v48 = vmul.f32 %v3691_v38, %v1559_v35  ;;  %v1562_v11 = vmul.f32 %v2488_v25, %v1560_v29  ;;  %v1563_v40 = vmul.f32 %v3691_v38, %v1558_v14  ;;  %vm3709_vm7 = vmmov %vm3693_vm0 }
 0x9a8   : > { %1672 = vmatpush1.bf16.msra.mxu0 %v1620_v61  ;;  %vm3706_vm11 = vcmp.lt.s32.totalorder %v2243_v4, 112 }
 0x9a9   : > { %v1622_v23 = vpack.c.bf16 %v1564_v31, %v1562_v11  ;;  %v1569_v21 = vpop.permute.xlu0 %1568  ;;  %v1567_v18 = vpop.permute.xlu1 %1566  ;;  %v1623_v54 = vpack.c.bf16 %v1565_v48, %v1563_v40  ;;  %vm3707_vm10 = vmmov %vm3706_vm11 }
 0x9aa   : > { %v1570_v0 = vsel %vm3692_vm2, %v1567_v18, %v1569_v21  ;;  %v1571_v33 = vsel %vm3693_vm0, %v1569_v21, %v1567_v18  ;;  %vm3710_vm2 = vmmov %vm3693_vm0 }
 0x9ab   : > { %v1572_v19 = vmul.f32 %v2488_v25, %v1571_v33  ;;  %v1573_v27 = vmul.f32 %v3691_v38, %v1570_v0  ;;  %1673 = vmatprep.subr.bf16.mxu0 %v1623_v54 }
 0x9ac   : > { %1674 = vmatpush1.bf16.msra.mxu0 %v1622_v23 }
 0x9ad   : > { %v1624_v15 = vpack.c.bf16 %v1574_v17, %v1572_v19  ;;  %v1583_v59 = vpop.permute.xlu0 %1582  ;;  %v1581_v58 = vpop.permute.xlu1 %1580  ;;  %v1625_v16 = vpack.c.bf16 %v1575_v62, %v1573_v27  ;;  %v1834_v62 = vld [vmem:[%s3561_s14] sm:$0xf] }
 0x9ae   : > { %v1773_v19 = vld [vmem:[%s3559_s12] sm:$0xff] }
 0x9af   : > { %1675 = vmatprep.subr.bf16.mxu0 %v1625_v16 }
 0x9b0   : > { %1676 = vmatpush1.bf16.msra.mxu0 %v1624_v15 }
 0x9b1   : > { %v1587_v60 = vpop.permute.xlu0 %1586  ;;  %v1585_v52 = vpop.permute.xlu1 %1584  ;;  %1677 = vmatprep.subr.bf16.mxu0 %v1627_v8 }
 0x9b2   : > { %v1589_v9 = vsel %vm3694_vm13, %v1583_v59, %v1587_v60  ;;  %v1591_v28 = vsel %vm3695_vm15, %v1587_v60, %v1583_v59  ;;  %v1588_v3 = vsel %vm3696_vm12, %v1581_v58, %v1585_v52  ;;  %v1590_v51 = vsel %vm3697_vm6, %v1585_v52, %v1581_v58  ;;  %vm3711_vm13 = vmmov %vm3701_vm1 }
 0x9b3   : > { %v1594_v20 = vmul.f32 %v3698_v30, %v1589_v9  ;;  %v1595_v1 = vmul.f32 %v3699_v36, %v1591_v28  ;;  %v1592_v26 = vmul.f32 %v3698_v30, %v1588_v3  ;;  %v1593_v12 = vmul.f32 %v3699_v36, %v1590_v51  ;;  %vm3712_vm15 = vmmov %vm3701_vm1 }
 0x9b4   : > { %1678 = vmatpush1.bf16.msra.mxu0 %v1626_v13  ;;  %vm3713_vm12 = vmmov %vm3701_vm1 }
 0x9b5   : > { %v1628_v63 = vpack.c.bf16 %v1594_v20, %v1592_v26  ;;  %v1599_v8 = vpop.permute.xlu0 %1598  ;;  %v1597_v57 = vpop.permute.xlu1 %1596  ;;  %v1629_v39 = vpack.c.bf16 %v1595_v1, %v1593_v12  ;;  %vm3714_vm6 = vmmov %vm3701_vm1 }
 0x9b6   : > { %v1600_v32 = vsel %vm3700_vm4, %v1597_v57, %v1599_v8  ;;  %v1601_v24 = vsel %vm3701_vm1, %v1599_v8, %v1597_v57  ;;  %vm3715_vm4 = vmmov %vm3693_vm0 }
 0x9b7   : > { %v1602_v10 = vmul.f32 %v3698_v30, %v1600_v32  ;;  %v1603_v61 = vmul.f32 %v3699_v36, %v1601_v24  ;;  %1679 = vmatprep.subr.bf16.mxu0 %v1629_v39  ;;  %vm3716_vm1 = vmmov %vm3693_vm0 }
 0x9b8   : > { %1680 = vmatpush1.bf16.msra.mxu0 %v1628_v63 }
 0x9b9   : > { %v1630_v37 = vpack.c.bf16 %v1602_v10, %v1602_v10  ;;  %v1631_v5 = vpack.c.bf16 %v1603_v61, %v1603_v61 }
 0x9bb   : > { %2059 = vmatprep.subr.msk.bf16.mxu0 %vm3702_vm8, %v1631_v5  ;;  %v1650_v2 = vsel %vm3703_vm14, %v1630_v37, 0  ;;  %vm3717_vm8 = vmmov %vm3714_vm6 }
 0x9bc   : > { %1682 = vmatpush1.bf16.msra.mxu0 %v1650_v2  ;;  %vm3718_vm14 = vmmov %vm3714_vm6 }
 0x9bf   : > { %1688 = vmatmul.mubr.bf16.vlgmr.msra.gmra.mrb[8].mxu0 %v2057_v47 }
 0x9c6   : > { %v1637_v13 = vpop.permute.xlu1 %1636 }
 0xa92   : > { %v1689_v35 = vpop.f32.mrb[8].mxu0 }
 0xa93   : > { %v1690_v34 = vadd.f32 %v1689_v35, %v1637_v13  ;;  %v1691_v14 = vpop.f32.mrb[9].mxu0 }
 0xa94   : > { %v1692_v29 = vadd.f32 %v1691_v14, %v1637_v13  ;;  %v1693_v31 = vpop.f32.mrb[10].mxu0 }
 0xa95   : > { %v3439_v48 = vmax.f32 %v1690_v34, 0.0  ;;  %v1694_v11 = vpop.f32.mrb[11].mxu0 }
 0xa96   : > { %v3441_v40 = vmax.f32 %v1692_v29, 0.0 }
 0xa97   : > { %1698 = vrot.lane.b32.xlu0 %v3439_v48, %s2110_s24 }
 0xa98   : > { %1700 = vrot.lane.b32.xlu1 %v3441_v40, %s2110_s24 }
 0xa9b   : > { %1704 = vrot.lane.b32.xlu0 %v3439_v48, %s2111_s25 }
 0xa9c   : > { %1706 = vrot.lane.b32.xlu1 %v3441_v40, %s2111_s25 }
 0xa9f   : > { %1728 = vrot.lane.b32.xlu0 %v3439_v48, %s2112_s26 }
 0xaa0   : > { %1730 = vrot.lane.b32.xlu1 %v3441_v40, %s2112_s26 }
 0xb09   : > { %v1699_v53 = vpop.permute.xlu0 %1698 }
 0xb0a   : > { %v1701_v23 = vpop.permute.xlu1 %1700 }
 0xb0b   : > { %v1702_v21 = vsel %vm3704_vm9, %v1699_v53, %v1701_v23  ;;  %v1703_v18 = vsel %vm3705_vm3, %v1701_v23, %v1699_v53  ;;  %vm3719_vm9 = vcmask 1043456   ;;  %v1772_v23 = vld [vmem:[%s3558_s11] sm:$0xf] }
 0xb0c   : > { %1710 = vrot.lane.b32.xlu0 %v1703_v18, %s2112_s26  ;;  %1712 = vrot.lane.b32.xlu1 %v1702_v21, %s2112_s26  ;;  %v1718_v52 = vmul.f32 %v2376_v41, %v1703_v18  ;;  %v1719_v9 = vmul.f32 %v2391_v43, %v1702_v21  ;;  %vm3720_vm3 = vmmov %vm3719_vm9 }
 0xb0d   : > { %v1705_v54 = vpop.permute.xlu0 %1704 }
 0xb0e   : > { %v1707_v0 = vpop.permute.xlu1 %1706 }
 0xb0f   : > { %v1708_v33 = vsel %vm3706_vm11, %v1705_v54, %v1707_v0  ;;  %v1709_v17 = vsel %vm3707_vm10, %v1707_v0, %v1705_v54  ;;  %vm3721_vm11 = vcmask 588800   ;;  %vm3722_vm10 = vmmov %vm3720_vm3 }
 0xb10   : > { %1720 = vrot.lane.b32.xlu0 %v1703_v18, %s2113_s27  ;;  %1722 = vrot.lane.b32.xlu1 %v1702_v21, %s2113_s27  ;;  %v1752_v35 = vmul.f32 %v2382_v42, %v1708_v33 }
 0xb11   : > { %v1729_v27 = vpop.permute.xlu0 %1728 }
 0xb12   : > { %v1731_v15 = vpop.permute.xlu1 %1730 }
 0xb13   : > { %v1732_v51 = vsel %vm3710_vm2, %v1729_v27, %v1731_v15  ;;  %v1733_v20 = vsel %vm3693_vm0, %v1731_v15, %v1729_v27  ;;  %v2120_v15 = vmov 1966171168  }
 0xb14   : > { %1736 = vrot.lane.b32.xlu0 %v3439_v48, %s2113_s27  ;;  %1738 = vrot.lane.b32.xlu1 %v3441_v40, %s2113_s27  ;;  %v1734_v43 = vmul.f32 %v2401_v45, %v1733_v20 }
 0xb18   : > { %1746 = vrot.lane.b32.xlu1 %v1709_v17, %s2112_s26  ;;  %1744 = vrot.lane.b32.xlu0 %v1708_v33, %s2112_s26 }
 0xb1c   : > { %1756 = vrot.lane.b32.xlu1 %v1709_v17, %s2113_s27  ;;  %1754 = vrot.lane.b32.xlu0 %v1708_v33, %s2113_s27 }
 0xb20   : > { %1837 = vperm.xlu1 %2089, %v1834_v62   ;;  %1776 = vperm.xlu0 %2088, %v1773_v19  }
 0xb7e   : > { %v1713_v59 = vpop.permute.xlu1 %1712  ;;  %v1711_v58 = vpop.permute.xlu0 %1710 }
 0xb7f   : > { %v1714_v16 = vsel %vm3708_vm5, %v1711_v58, %v1713_v59  ;;  %v1715_v60 = vsel %vm3709_vm7, %v1713_v59, %v1711_v58  ;;  %vm3723_vm5 = vmmov %vm3720_vm3  ;;  %vm1840_vm7 = vcmask 64512   ;;  %v1917_v59 = vunpack.c.l.s4 %v2120_v15 }
 0xb80   : > { %v1716_v28 = vmul.f32 %v2433_v55, %v1715_v60  ;;  %v1717_v3 = vmul.f32 %v2436_v56, %v1714_v16  ;;  %v1735_v55 = vmul.f32 %v2404_v46, %v1732_v51  ;;  %v3724_v60 = vlaneseq }
 0xb82   : > { %v1762_v1 = vpack.c.bf16 %v1718_v52, %v1716_v28  ;;  %v1723_v26 = vpop.permute.xlu1 %1722  ;;  %v1721_v12 = vpop.permute.xlu0 %1720  ;;  %v1763_v63 = vpack.c.bf16 %v1719_v9, %v1717_v3  ;;  %v1920_v52 = vshrl.u32 %v3724_v60, 7  ;;  %v1918_v9 = vunpack.c.0.s8 %v1917_v59 }
 0xb83   : > { %v1724_v8 = vsel %vm3711_vm13, %v1721_v12, %v1723_v26  ;;  %v1725_v41 = vsel %vm3712_vm15, %v1723_v26, %v1721_v12  ;;  %vm1933_vm2 = vcmp.lt.s32.totalorder %v3724_v60, 256 }
 0xb84   : > { %v1726_v56 = vmul.f32 %v2457_v6, %v1724_v8  ;;  %v1727_v57 = vmul.f32 %v2460_v7, %v1725_v41  ;;  %1788 = vmatprep.subr.bf16.mxu1 %v1763_v63  ;;  %v3725_v63 = vld [vmem:[#allocation2_spill] sm:$0xff]  ;;  %v1921_v41 = vsub.s32 %v1918_v9, %v1920_v52 }
 0xb85   : > { %1789 = vmatpush1.bf16.msra.mxu1 %v1762_v1  ;;  %v2101_v1 = vld [vmem:[%s2217_s23] sm:$0xff] }
 0xb86   : > { %v1764_v39 = vpack.c.bf16 %v1734_v43, %v1726_v56  ;;  %v1739_v32 = vpop.permute.xlu1 %1738  ;;  %v1737_v24 = vpop.permute.xlu0 %1736  ;;  %v1765_v10 = vpack.c.bf16 %v1735_v55, %v1727_v57 }
 0xb87   : > { %v1740_v61 = vsel %vm3713_vm12, %v1737_v24, %v1739_v32  ;;  %v1741_v37 = vsel %vm3714_vm6, %v1739_v32, %v1737_v24 }
 0xb88   : > { %v1742_v45 = vmul.f32 %v2413_v49, %v1740_v61  ;;  %v1743_v46 = vmul.f32 %v2416_v50, %v1741_v37  ;;  %1790 = vmatprep.subr.bf16.mxu1 %v1765_v10  ;;  %v1753_v49 = vmul.f32 %v2396_v44, %v1709_v17 }
 0xb89   : > { %1791 = vmatpush1.bf16.msra.mxu1 %v1764_v39 }
 0xb8a   : > { %v1766_v6 = vpack.c.bf16 %v1742_v45, %v3439_v48  ;;  %v1747_v7 = vpop.permute.xlu1 %1746  ;;  %v1745_v5 = vpop.permute.xlu0 %1744  ;;  %v1767_v2 = vpack.c.bf16 %v1743_v46, %v3441_v40 }
 0xb8b   : > { %v1748_v47 = vsel %vm3715_vm4, %v1745_v5, %v1747_v7  ;;  %v1749_v13 = vsel %vm3716_vm1, %v1747_v7, %v1745_v5 }
 0xb8c   : > { %v1750_v50 = vmul.f32 %v2488_v25, %v1749_v13  ;;  %v1751_v34 = vmul.f32 %v3691_v38, %v1748_v47  ;;  %1792 = vmatprep.subr.bf16.mxu1 %v1767_v2  ;;  %v1938_v2 = vsub.s32 1, %v1920_v52 }
 0xb8d   : > { %1793 = vmatpush1.bf16.msra.mxu1 %v1766_v6 }
 0xb8e   : > { %v1768_v14 = vpack.c.bf16 %v1752_v35, %v1750_v50  ;;  %v1757_v29 = vpop.permute.xlu1 %1756  ;;  %v1755_v31 = vpop.permute.xlu0 %1754  ;;  %v1769_v48 = vpack.c.bf16 %v1753_v49, %v1751_v34 }
 0xb8f   : > { %v1758_v11 = vsel %vm3717_vm8, %v1755_v31, %v1757_v29  ;;  %v1759_v40 = vsel %vm3718_vm14, %v1757_v29, %v1755_v31 }
 0xb90   : > { %v1760_v42 = vmul.f32 %v3698_v30, %v1758_v11  ;;  %v1761_v44 = vmul.f32 %v3699_v36, %v1759_v40  ;;  %1794 = vmatprep.subr.bf16.mxu1 %v1769_v48 }
 0xb91   : > { %1795 = vmatpush1.bf16.msra.mxu1 %v1768_v14 }
 0xb92   : > { %v1770_v25 = vpack.c.bf16 %v1760_v42, %v1760_v42  ;;  %v1771_v38 = vpack.c.bf16 %v1761_v44, %v1761_v44 }
 0xb94   : > { %2061 = vmatprep.subr.msk.bf16.mxu1 %vm3719_vm9, %v1771_v38  ;;  %v1783_v53 = vsel %vm3720_vm3, %v1770_v25, 0 }
 0xb95   : > { %1797 = vmatpush1.bf16.msra.mxu1 %v1783_v53 }
 0xb98   : > { %2062 = vmatmul.mubr.msk.bf16.vlgmr.msra.gmra.mrb[8].mxu1 %vm3721_vm11, %v1772_v23 }
 0xb99   : > { %1882 = vmatprep.mubr.bf16.mxu1 %v3654_v22  ;;  %v1831_v22 = vld [vmem:[%s3560_s13] sm:$0x3] }
 0xb9f   : > { %v1777_v4 = vpop.permute.xlu0 %1776  ;;  %v1838_v58 = vpop.permute.xlu1 %1837 }
 0xc6b   : > { %v1822_v30 = vpop.f32.mrb[8].mxu1 }
 0xc6c   : > { %v1823_v36 = vadd.f32 %v1822_v30, %v1777_v4  ;;  %v1824_v21 = vpop.f32.mrb[9].mxu1 }
 0xc6d   : > { %v1825_v18 = vadd.f32 %v1824_v21, %v1777_v4  ;;  %v1826_v54 = vpop.f32.mrb[10].mxu1 }
 0xc6e   : > { %v1829_v0 = vmax.f32 %v1823_v36, 0.0  ;;  %v1827_v33 = vpop.f32.mrb[11].mxu1 }
 0xc6f   : > { %v1830_v17 = vmax.f32 %v1825_v18, 0.0 }
 0xc70   : > { %v1832_v62 = vpack.c.bf16 %v1829_v0, %v1829_v0 }
 0xc71   : > { %v1833_v19 = vpack.c.bf16 %v1830_v17, %v1830_v17 }
 0xc72   : > { %v1845_v27 = vsel %vm3722_vm10, %v1832_v62, 0 }
 0xc73   : > { %2063 = vmatprep.subr.msk.bf16.mxu1 %vm3723_vm5, %v1833_v19 }
 0xc74   : > { %1851 = vmatpush1.bf16.msra.mxu1 %v1845_v27 }
 0xc77   : > { %2064 = vmatmul.mubr.msk.bf16.vlgmr.msra.gmra.mrb[12].mxu1 %vm1840_vm7, %v1831_v22 }
 0xd4a   : > { %v1884_v16 = vpop.f32.mrb[12].mxu1 }
 0xd4b   : > { %v1885_v28 = vadd.f32 %v1884_v16, %v1838_v58  ;;  %v1886_v3 = vpop.f32.mrb[13].mxu1 }
 0xd4c   : > { %v1887_v51 = vadd.f32 %v1886_v3, %v1838_v58  ;;  %v1888_v20 = vpop.f32.mrb[14].mxu1 }
 0xd4d   : > { %v1891_v26 = vadd.f32 %v2101_v1, %v1885_v28  ;;  %v1889_v12 = vpop.f32.mrb[15].mxu1 }
 0xd4e   : > { %v1892_v8 = vadd.f32 %v1887_v51, %v3725_v63 }
 0xd4f   : > { %v1893_v43 = vmul.f32 %v1891_v26, %v1891_v26 }
 0xd50   : > { %v1894_v55 = vmul.f32 %v1892_v8, %v1892_v8  ;;  %v1915_v56 = vcombine.low %v1891_v26, %v1892_v8 }
 0xd51   : > { %v1897_v57 = vrot.slane %v1893_v43, 1  ;;  %v1903_v10 = vrot.slane %v1893_v43, 2 }
 0xd52   : > { %v1898_v39 = vrot.slane %v1894_v55, 1  ;;  %v1922_v32 = vrot.slane %v1915_v56, %v1921_v41  ;;  %v1904_v37 = vrot.slane %v1894_v55, 2 }
 0xd53   : > { %v1901_v24 = vadd.f32 %v1897_v57, %v1893_v43 }
 0xd54   : > { %v1902_v61 = vadd.f32 %v1898_v39, %v1894_v55  ;;  %v1929_v45 = vrot.slane %v1922_v32, %v1921_v41 }
 0xd55   : > { %v1907_v46 = vadd.f32 %v1903_v10, %v1901_v24 }
 0xd56   : > { %v1908_v6 = vadd.f32 %v1904_v37, %v1902_v61  ;;  %1935 = vst.msk [vmem:[%s494_s28] ss:$4 sm:$0x3] %vm1933_vm2, %v1929_v45 }
 0xd57   : > { %v1909_v7 = vmax.f32 %v1907_v46, 1e-24 }
 0xd58   : > { %v1910_v5 = vmax.f32 %v1908_v6, 1e-24 }
 0xd59   : > { %2097 = vrsqrt.f32 %v1909_v7 }
 0xd5a   : > { %2099 = vrsqrt.f32 %v1910_v5 }
 0xd63   : > { %v2098_v47 = vpop.eup %2097 }
 0xd64   : > { %v2100_v13 = vpop.eup %2099  ;;  %v1939_v35 = vrot.slane %v2098_v47, %v1938_v2 }
 0xd65   : > { %v1943_v49 = vrot.slane %v2100_v13, %v1938_v2 }
 0xd66   : > { %v1944_v50 = vmul.f32 %v1939_v35, %v1891_v26 }
 0xd67   : > { %v1945_v34 = vmul.f32 %v1943_v49, %v1892_v8 }
 0xd69   : > { %v1948_v14 = vcombine.low %v1944_v50, %v1945_v34 }
 0xd6b   : > { %1950 = vst [vmem:[%s494_s28] sm:$0xee] %v1948_v14 }
 0xd6c PF: > { %s25_s18 = sadd.s32 1, %s2108_s18  }
 0xd6d   : > { %p22_p4 = scmp.ge.s32.totalorder %s25_s18, 4  }
 0xd6f   :  { %24 = sbr.rel (!%p22_p4) target bundleno = 1 (0x1), region = 110 }

</bundles_post_ra>
